<compile_context>
chip_gen: v5e
topology: v5e:2x2
jax: 0.10.0
libtpu: 0.0.40
codegen_flags: <defaults>
</compile_context>

<pallas_src>
import functools

import jax
import jax.numpy as jnp
from jax import lax
from jax.experimental import pallas as pl
from jax.experimental.pallas import tpu as pltpu


def _lstm_forward_kernel(x_ref,                # (T*B, D)   time-major, 8-row blocks
                         w_ih0_ref,            # (D, 4H)
                         w_hh0_ref,            # (H, 4H)
                         b0_ref,               # (1, 4H)
                         w01_ref,              # (2H, 4H)  = [w_ih1; w_hh1]
                         b1_ref,               # (1, 4H)
                         fc_w_ref,             # (H, out)  = fc1_w @ fc_w
                         fc_b_ref,             # (1, out)  = fc1_b @ fc_w + fc_b
                         out_ref,              # (B, out)
                         xw0_ref,              # scratch (T*B, 4H)
                         *, seq_len):
    B = out_ref.shape[0]
    H = w_hh0_ref.shape[0]
    G = 4 * H

    # ---- Hoisted layer-0 input projection: one matmul for all T steps, bias
    # ---- folded in here so nothing bias-related runs inside the recurrence.
    xw0_ref[...] = (jnp.dot(x_ref[...], w_ih0_ref[...],
                            preferred_element_type=jnp.float32)
                    + b0_ref[...])

    # ---- Loop-invariant loads / broadcasts, hoisted out of the serial chain.
    w_hh0 = w_hh0_ref[...]
    w01 = w01_ref[...]
    b1 = jnp.broadcast_to(b1_ref[...], (B, G))     # broadcast once, not per step

    zeros = jnp.zeros((B, H), jnp.float32)

    def lstm_update(gates, c):
        # Full 128-lane activations: 2 EUP passes over (B, 4H) instead of four
        # 32-lane passes, then static lane slices. PyTorch gate order: i, f, g, o.
        sg = jax.nn.sigmoid(gates)
        th = jnp.tanh(gates)
        i = sg[:, 0 * H:1 * H]
        f = sg[:, 1 * H:2 * H]
        g = th[:, 2 * H:3 * H]
        o = sg[:, 3 * H:4 * H]
        c_new = f * c + i * g
        h_new = o * jnp.tanh(c_new)
        return h_new, c_new

    def step(t, carry):
        h0, c0, h1, c1 = carry
        row = pl.multiple_of(t * B, B)                      # aligned sublane block
        xw0_t = xw0_ref[pl.ds(row, B), :]                   # (B, 4H)

        # Layer 0: a single matmul on the serial chain.
        g0 = jnp.dot(h0, w_hh0, preferred_element_type=jnp.float32) + xw0_t
        h0, c0 = lstm_update(g0, c0)

        # Layer 1: fused [h0, h1] @ [w_ih1; w_hh1] -> single matmul.
        h01 = jnp.concatenate([h0, h1], axis=1)             # (B, 2H)
        g1 = jnp.dot(h01, w01, preferred_element_type=jnp.float32) + b1
        h1, c1 = lstm_update(g1, c1)
        return (h0, c0, h1, c1)

    # T is static -> fully unrolled so the scheduler can overlap EUP/MXU work
    # across timestep boundaries.
    _, _, h1, _ = lax.fori_loop(0, seq_len, step,
                                (zeros, zeros, zeros, zeros), unroll=True)

    # ---- Epilogue: relu -> fused (fc1 then fc) -> sigmoid (last timestep only;
    # fc1 is per-timestep in the reference, but only t = T-1 reaches fc).
    y = jnp.maximum(h1, 0.0)
    y = jnp.dot(y, fc_w_ref[...], preferred_element_type=jnp.float32) + fc_b_ref[...]
    out_ref[...] = jax.nn.sigmoid(y)


def lstm_model_pallas(x, params, *, output_dim):
    """x: (batch, seq, input_dim) float32 -> (batch, output_dim) float32."""
    B, T, D = x.shape
    H = params["w_hh0"].shape[0]

    # Pad batch to a multiple of 8 so every (B, 4H) gate tensor fills the f32
    # (8, 128) sublane tile (padded rows are zeros; sliced off at the end).
    B_pad = max(8, -(-B // 8) * 8)
    if B_pad != B:
        x = jnp.pad(x, ((0, B_pad - B), (0, 0), (0, 0)))

    # (B, T, D) -> (T, B, D) -> (T*B, D): time-major, one aligned 8-row block
    # per timestep, so the kernel never needs a 3-D reshape.
    x2d = jnp.transpose(x, (1, 0, 2)).reshape(T * B_pad, D)

    # Stack layer-1 weights so [h0, h1] @ w01 is a single matmul.
    w01 = jnp.concatenate([params["w_ih1"], params["w_hh1"]], axis=0)   # (2H, 4H)

    # Fuse fc1 and fc (no nonlinearity between them).
    fc_w = params["fc1_w"] @ params["fc_w"]                              # (H, out)
    fc_b = params["fc1_b"] @ params["fc_w"] + params["fc_b"]             # (1, out)

    args = (x2d,
            params["w_ih0"], params["w_hh0"], params["b0"],
            w01, params["b1"],
            fc_w, fc_b)

    vmem_spec = pl.BlockSpec(memory_space=pltpu.MemorySpace.VMEM)
    out = pl.pallas_call(
        functools.partial(_lstm_forward_kernel, seq_len=T),
        out_shape=jax.ShapeDtypeStruct((B_pad, output_dim), jnp.float32),
        in_specs=[vmem_spec] * len(args),
        out_specs=vmem_spec,
        scratch_shapes=[pltpu.VMEM((T * B_pad, 4 * H), jnp.float32)],
    )(*args)
    return out[:B]


def init_params(key, input_dim, hidden_dim, output_dim):
    """Deterministic init; PyTorch-style uniform(-1/sqrt(fan), 1/sqrt(fan)).

    LSTM weights are stored pre-transposed: w_ih* is (in_dim, 4H), w_hh* is
    (H, 4H); b* = b_ih + b_hh combined, shaped (1, 4H). fc weights are
    (in_features, out_features).
    """
    H = hidden_dim
    k_lstm = 1.0 / jnp.sqrt(jnp.float32(H))
    k_fc1 = 1.0 / jnp.sqrt(jnp.float32(H))
    k_fc = 1.0 / jnp.sqrt(jnp.float32(64))
    keys = jax.random.split(key, 10)

    def u(k, shape, scale):
        return jax.random.uniform(k, shape, jnp.float32, -scale, scale)

    return {
        "w_ih0": u(keys[0], (input_dim, 4 * H), k_lstm),
        "w_hh0": u(keys[1], (H, 4 * H), k_lstm),
        "b0":    u(keys[2], (1, 4 * H), k_lstm),
        "w_ih1": u(keys[3], (H, 4 * H), k_lstm),
        "w_hh1": u(keys[4], (H, 4 * H), k_lstm),
        "b1":    u(keys[5], (1, 4 * H), k_lstm),
        "fc1_w": u(keys[6], (H, 64), k_fc1),
        "fc1_b": u(keys[7], (1, 64), k_fc1),
        "fc_w":  u(keys[8], (64, output_dim), k_fc),
        "fc_b":  u(keys[9], (1, output_dim), k_fc),
    }


def lstm_model_reference(x, params):
    """Pure-JAX reference with identical semantics (validation only, unfused)."""
    B, T, _ = x.shape
    H = params["w_hh0"].shape[0]

    def cell(x_t, h, c, w_ih, w_hh, b):
        g = x_t @ w_ih + h @ w_hh + b
        i = jax.nn.sigmoid(g[:, 0 * H:1 * H])
        f = jax.nn.sigmoid(g[:, 1 * H:2 * H])
        gg = jnp.tanh(g[:, 2 * H:3 * H])
        o = jax.nn.sigmoid(g[:, 3 * H:4 * H])
        c = f * c + i * gg
        h = o * jnp.tanh(c)
        return h, c

    h0 = c0 = h1 = c1 = jnp.zeros((B, H), jnp.float32)
    outs = []
    for t in range(T):
        h0, c0 = cell(x[:, t, :], h0, c0, params["w_ih0"], params["w_hh0"], params["b0"])
        h1, c1 = cell(h0, h1, c1, params["w_ih1"], params["w_hh1"], params["b1"])
        outs.append(h1)
    out = jnp.stack(outs, axis=1)                      # (B, T, H)
    out = jnp.maximum(out, 0.0)                        # ReLU
    out = out @ params["fc1_w"] + params["fc1_b"]      # fc1 on every timestep
    out = out[:, -1, :] @ params["fc_w"] + params["fc_b"]
    return jax.nn.sigmoid(out)


if __name__ == "__main__":
    # Small shapes consistent with the module's forward:
    #   x: (batch, seq, input_dim), hidden_dim=32, num_layers=2, output_dim=4
    batch, seq, input_dim, hidden_dim, output_dim = 2, 8, 4, 32, 4

    key = jax.random.PRNGKey(0)
    k_x, k_p = jax.random.split(key)
    x = jax.random.normal(k_x, (batch, seq, input_dim), jnp.float32)
    params = init_params(k_p, input_dim, hidden_dim, output_dim)

    run = jax.jit(functools.partial(lstm_model_pallas, output_dim=output_dim))
    out = run(x, params)
    out = jax.block_until_ready(out)

    ref = lstm_model_reference(x, params)
    assert out.shape == (batch, output_dim), out.shape
    assert jnp.allclose(out, ref, atol=1e-5, rtol=1e-5), (out, ref)

    print("KERNEL_OK")
</pallas_src>

<mosaic_0001>
module attributes {stable_mosaic.version = 11 : i64} {
  func.func @_lstm_forward_kernel(%arg0: memref<64x4xf32, #tpu.memory_space<vmem>>, %arg1: memref<4x128xf32, #tpu.memory_space<vmem>>, %arg2: memref<32x128xf32, #tpu.memory_space<vmem>>, %arg3: memref<1x128xf32, #tpu.memory_space<vmem>>, %arg4: memref<64x128xf32, #tpu.memory_space<vmem>>, %arg5: memref<1x128xf32, #tpu.memory_space<vmem>>, %arg6: memref<32x4xf32, #tpu.memory_space<vmem>>, %arg7: memref<1x4xf32, #tpu.memory_space<vmem>>, %arg8: memref<8x4xf32, #tpu.memory_space<vmem>>, %arg9: memref<64x128xf32, #tpu.memory_space<vmem>>) attributes {dimension_semantics = [], scalar_prefetch = 0 : i64, scratch_operands = 1 : i64, tpu.core_type = #tpu.core_type<tc>} {
    %c0 = arith.constant 0 : index
    %c0_0 = arith.constant 0 : index
    %0 = vector.load %arg0[%c0, %c0_0] : memref<64x4xf32, #tpu.memory_space<vmem>>, vector<64x4xf32>
    %c0_1 = arith.constant 0 : index
    %c0_2 = arith.constant 0 : index
    %1 = vector.load %arg1[%c0_1, %c0_2] : memref<4x128xf32, #tpu.memory_space<vmem>>, vector<4x128xf32>
    %cst = arith.constant dense<0.000000e+00> : vector<64x128xf32>
    %2 = tpu.matmul %0, %1, %cst {dimension_numbers = #tpu.dot_dimension_numbers<[1], [0], [0], [1], [0, 0, 1, 1], [], []>} : vector<64x4xf32>, vector<4x128xf32>, vector<64x128xf32> -> vector<64x128xf32>
    %c0_3 = arith.constant 0 : index
    %c0_4 = arith.constant 0 : index
    %3 = vector.load %arg3[%c0_3, %c0_4] : memref<1x128xf32, #tpu.memory_space<vmem>>, vector<1x128xf32>
    %4 = vector.broadcast %3 : vector<1x128xf32> to vector<64x128xf32>
    %5 = arith.addf %2, %4 : vector<64x128xf32>
    %c0_5 = arith.constant 0 : index
    %c0_6 = arith.constant 0 : index
    %6 = vector.load %arg9[%c0_5, %c0_6] : memref<64x128xf32, #tpu.memory_space<vmem>>, vector<64x128xf32>
    tpu.vector_store %arg9[%c0_5, %c0_6], %5 {strides = array<i32>} : memref<64x128xf32, #tpu.memory_space<vmem>>, vector<64x128xf32>,
    %c0_7 = arith.constant 0 : index
    %c0_8 = arith.constant 0 : index
    %7 = vector.load %arg2[%c0_7, %c0_8] : memref<32x128xf32, #tpu.memory_space<vmem>>, vector<32x128xf32>
    %c0_9 = arith.constant 0 : index
    %c0_10 = arith.constant 0 : index
    %8 = vector.load %arg4[%c0_9, %c0_10] : memref<64x128xf32, #tpu.memory_space<vmem>>, vector<64x128xf32>
    %c0_11 = arith.constant 0 : index
    %c0_12 = arith.constant 0 : index
    %9 = vector.load %arg5[%c0_11, %c0_12] : memref<1x128xf32, #tpu.memory_space<vmem>>, vector<1x128xf32>
    %10 = vector.shape_cast %9 : vector<1x128xf32> to vector<1x128xf32>
    %11 = vector.broadcast %10 : vector<1x128xf32> to vector<8x128xf32>
    %cst_13 = arith.constant 0.000000e+00 : f32
    %12 = vector.broadcast %cst_13 : f32 to vector<8x32xf32>
    %c0_i32 = arith.constant 0 : i32
    %c8_i32 = arith.constant 8 : i32
    %13 = arith.muli %c0_i32, %c8_i32 : i32
    %14 = tpu.assume_multiple %13, 8 : i32
    %15 = arith.index_cast %14 : i32 to index
    %c0_14 = arith.constant 0 : index
    %16 = vector.load %arg9[%15, %c0_14] : memref<64x128xf32, #tpu.memory_space<vmem>>, vector<8x128xf32>
    %cst_15 = arith.constant dense<0.000000e+00> : vector<8x128xf32>
    %17 = tpu.matmul %12, %7, %cst_15 {dimension_numbers = #tpu.dot_dimension_numbers<[1], [0], [0], [1], [0, 0, 1, 1], [], []>} : vector<8x32xf32>, vector<32x128xf32>, vector<8x128xf32> -> vector<8x128xf32>
    %18 = arith.addf %17, %16 : vector<8x128xf32>
    %19 = arith.negf %18 : vector<8x128xf32>
    %20 = math.exp %19 : vector<8x128xf32>
    %cst_16 = arith.constant 1.000000e+00 : f32
    %21 = vector.broadcast %cst_16 : f32 to vector<8x128xf32>
    %22 = arith.addf %21, %20 : vector<8x128xf32>
    %23 = arith.divf %21, %22 : vector<8x128xf32>
    %24 = math.tanh %18 : vector<8x128xf32>
    %25 = vector.extract_strided_slice %23 {offsets = [0, 0], sizes = [8, 32], strides = [1, 1]} : vector<8x128xf32> to vector<8x32xf32>
    %26 = vector.extract_strided_slice %23 {offsets = [0, 32], sizes = [8, 32], strides = [1, 1]} : vector<8x128xf32> to vector<8x32xf32>
    %27 = vector.extract_strided_slice %24 {offsets = [0, 64], sizes = [8, 32], strides = [1, 1]} : vector<8x128xf32> to vector<8x32xf32>
    %28 = vector.extract_strided_slice %23 {offsets = [0, 96], sizes = [8, 32], strides = [1, 1]} : vector<8x128xf32> to vector<8x32xf32>
    %29 = arith.mulf %26, %12 : vector<8x32xf32>
    %30 = arith.mulf %25, %27 : vector<8x32xf32>
    %31 = arith.addf %29, %30 : vector<8x32xf32>
    %32 = math.tanh %31 : vector<8x32xf32>
    %33 = arith.mulf %28, %32 : vector<8x32xf32>
    %34 = tpu.concatenate %33, %12 in 1 : vector<8x32xf32>, vector<8x32xf32> -> vector<8x64xf32>
    %cst_17 = arith.constant dense<0.000000e+00> : vector<8x128xf32>
    %35 = tpu.matmul %34, %8, %cst_17 {dimension_numbers = #tpu.dot_dimension_numbers<[1], [0], [0], [1], [0, 0, 1, 1], [], []>} : vector<8x64xf32>, vector<64x128xf32>, vector<8x128xf32> -> vector<8x128xf32>
    %36 = arith.addf %35, %11 : vector<8x128xf32>
    %37 = arith.negf %36 : vector<8x128xf32>
    %38 = math.exp %37 : vector<8x128xf32>
    %cst_18 = arith.constant 1.000000e+00 : f32
    %39 = vector.broadcast %cst_18 : f32 to vector<8x128xf32>
    %40 = arith.addf %39, %38 : vector<8x128xf32>
    %41 = arith.divf %39, %40 : vector<8x128xf32>
    %42 = math.tanh %36 : vector<8x128xf32>
    %43 = vector.extract_strided_slice %41 {offsets = [0, 0], sizes = [8, 32], strides = [1, 1]} : vector<8x128xf32> to vector<8x32xf32>
    %44 = vector.extract_strided_slice %41 {offsets = [0, 32], sizes = [8, 32], strides = [1, 1]} : vector<8x128xf32> to vector<8x32xf32>
    %45 = vector.extract_strided_slice %42 {offsets = [0, 64], sizes = [8, 32], strides = [1, 1]} : vector<8x128xf32> to vector<8x32xf32>
    %46 = vector.extract_strided_slice %41 {offsets = [0, 96], sizes = [8, 32], strides = [1, 1]} : vector<8x128xf32> to vector<8x32xf32>
    %47 = arith.mulf %44, %12 : vector<8x32xf32>
    %48 = arith.mulf %43, %45 : vector<8x32xf32>
    %49 = arith.addf %47, %48 : vector<8x32xf32>
    %50 = math.tanh %49 : vector<8x32xf32>
    %51 = arith.mulf %46, %50 : vector<8x32xf32>
    %c1_i32 = arith.constant 1 : i32
    %c8_i32_19 = arith.constant 8 : i32
    %52 = arith.muli %c1_i32, %c8_i32_19 : i32
    %53 = tpu.assume_multiple %52, 8 : i32
    %54 = arith.index_cast %53 : i32 to index
    %c0_20 = arith.constant 0 : index
    %55 = vector.load %arg9[%54, %c0_20] : memref<64x128xf32, #tpu.memory_space<vmem>>, vector<8x128xf32>
    %cst_21 = arith.constant dense<0.000000e+00> : vector<8x128xf32>
    %56 = tpu.matmul %33, %7, %cst_21 {dimension_numbers = #tpu.dot_dimension_numbers<[1], [0], [0], [1], [0, 0, 1, 1], [], []>} : vector<8x32xf32>, vector<32x128xf32>, vector<8x128xf32> -> vector<8x128xf32>
    %57 = arith.addf %56, %55 : vector<8x128xf32>
    %58 = arith.negf %57 : vector<8x128xf32>
    %59 = math.exp %58 : vector<8x128xf32>
    %cst_22 = arith.constant 1.000000e+00 : f32
    %60 = vector.broadcast %cst_22 : f32 to vector<8x128xf32>
    %61 = arith.addf %60, %59 : vector<8x128xf32>
    %62 = arith.divf %60, %61 : vector<8x128xf32>
    %63 = math.tanh %57 : vector<8x128xf32>
    %64 = vector.extract_strided_slice %62 {offsets = [0, 0], sizes = [8, 32], strides = [1, 1]} : vector<8x128xf32> to vector<8x32xf32>
    %65 = vector.extract_strided_slice %62 {offsets = [0, 32], sizes = [8, 32], strides = [1, 1]} : vector<8x128xf32> to vector<8x32xf32>
    %66 = vector.extract_strided_slice %63 {offsets = [0, 64], sizes = [8, 32], strides = [1, 1]} : vector<8x128xf32> to vector<8x32xf32>
    %67 = vector.extract_strided_slice %62 {offsets = [0, 96], sizes = [8, 32], strides = [1, 1]} : vector<8x128xf32> to vector<8x32xf32>
    %68 = arith.mulf %65, %31 : vector<8x32xf32>
    %69 = arith.mulf %64, %66 : vector<8x32xf32>
    %70 = arith.addf %68, %69 : vector<8x32xf32>
    %71 = math.tanh %70 : vector<8x32xf32>
    %72 = arith.mulf %67, %71 : vector<8x32xf32>
    %73 = tpu.concatenate %72, %51 in 1 : vector<8x32xf32>, vector<8x32xf32> -> vector<8x64xf32>
    %cst_23 = arith.constant dense<0.000000e+00> : vector<8x128xf32>
    %74 = tpu.matmul %73, %8, %cst_23 {dimension_numbers = #tpu.dot_dimension_numbers<[1], [0], [0], [1], [0, 0, 1, 1], [], []>} : vector<8x64xf32>, vector<64x128xf32>, vector<8x128xf32> -> vector<8x128xf32>
    %75 = arith.addf %74, %11 : vector<8x128xf32>
    %76 = arith.negf %75 : vector<8x128xf32>
    %77 = math.exp %76 : vector<8x128xf32>
    %cst_24 = arith.constant 1.000000e+00 : f32
    %78 = vector.broadcast %cst_24 : f32 to vector<8x128xf32>
    %79 = arith.addf %78, %77 : vector<8x128xf32>
    %80 = arith.divf %78, %79 : vector<8x128xf32>
    %81 = math.tanh %75 : vector<8x128xf32>
    %82 = vector.extract_strided_slice %80 {offsets = [0, 0], sizes = [8, 32], strides = [1, 1]} : vector<8x128xf32> to vector<8x32xf32>
    %83 = vector.extract_strided_slice %80 {offsets = [0, 32], sizes = [8, 32], strides = [1, 1]} : vector<8x128xf32> to vector<8x32xf32>
    %84 = vector.extract_strided_slice %81 {offsets = [0, 64], sizes = [8, 32], strides = [1, 1]} : vector<8x128xf32> to vector<8x32xf32>
    %85 = vector.extract_strided_slice %80 {offsets = [0, 96], sizes = [8, 32], strides = [1, 1]} : vector<8x128xf32> to vector<8x32xf32>
    %86 = arith.mulf %83, %49 : vector<8x32xf32>
    %87 = arith.mulf %82, %84 : vector<8x32xf32>
    %88 = arith.addf %86, %87 : vector<8x32xf32>
    %89 = math.tanh %88 : vector<8x32xf32>
    %90 = arith.mulf %85, %89 : vector<8x32xf32>
    %c2_i32 = arith.constant 2 : i32
    %c8_i32_25 = arith.constant 8 : i32
    %91 = arith.muli %c2_i32, %c8_i32_25 : i32
    %92 = tpu.assume_multiple %91, 8 : i32
    %93 = arith.index_cast %92 : i32 to index
    %c0_26 = arith.constant 0 : index
    %94 = vector.load %arg9[%93, %c0_26] : memref<64x128xf32, #tpu.memory_space<vmem>>, vector<8x128xf32>
    %cst_27 = arith.constant dense<0.000000e+00> : vector<8x128xf32>
    %95 = tpu.matmul %72, %7, %cst_27 {dimension_numbers = #tpu.dot_dimension_numbers<[1], [0], [0], [1], [0, 0, 1, 1], [], []>} : vector<8x32xf32>, vector<32x128xf32>, vector<8x128xf32> -> vector<8x128xf32>
    %96 = arith.addf %95, %94 : vector<8x128xf32>
    %97 = arith.negf %96 : vector<8x128xf32>
    %98 = math.exp %97 : vector<8x128xf32>
    %cst_28 = arith.constant 1.000000e+00 : f32
    %99 = vector.broadcast %cst_28 : f32 to vector<8x128xf32>
    %100 = arith.addf %99, %98 : vector<8x128xf32>
    %101 = arith.divf %99, %100 : vector<8x128xf32>
    %102 = math.tanh %96 : vector<8x128xf32>
    %103 = vector.extract_strided_slice %101 {offsets = [0, 0], sizes = [8, 32], strides = [1, 1]} : vector<8x128xf32> to vector<8x32xf32>
    %104 = vector.extract_strided_slice %101 {offsets = [0, 32], sizes = [8, 32], strides = [1, 1]} : vector<8x128xf32> to vector<8x32xf32>
    %105 = vector.extract_strided_slice %102 {offsets = [0, 64], sizes = [8, 32], strides = [1, 1]} : vector<8x128xf32> to vector<8x32xf32>
    %106 = vector.extract_strided_slice %101 {offsets = [0, 96], sizes = [8, 32], strides = [1, 1]} : vector<8x128xf32> to vector<8x32xf32>
    %107 = arith.mulf %104, %70 : vector<8x32xf32>
    %108 = arith.mulf %103, %105 : vector<8x32xf32>
    %109 = arith.addf %107, %108 : vector<8x32xf32>
    %110 = math.tanh %109 : vector<8x32xf32>
    %111 = arith.mulf %106, %110 : vector<8x32xf32>
    %112 = tpu.concatenate %111, %90 in 1 : vector<8x32xf32>, vector<8x32xf32> -> vector<8x64xf32>
    %cst_29 = arith.constant dense<0.000000e+00> : vector<8x128xf32>
    %113 = tpu.matmul %112, %8, %cst_29 {dimension_numbers = #tpu.dot_dimension_numbers<[1], [0], [0], [1], [0, 0, 1, 1], [], []>} : vector<8x64xf32>, vector<64x128xf32>, vector<8x128xf32> -> vector<8x128xf32>
    %114 = arith.addf %113, %11 : vector<8x128xf32>
    %115 = arith.negf %114 : vector<8x128xf32>
    %116 = math.exp %115 : vector<8x128xf32>
    %cst_30 = arith.constant 1.000000e+00 : f32
    %117 = vector.broadcast %cst_30 : f32 to vector<8x128xf32>
    %118 = arith.addf %117, %116 : vector<8x128xf32>
    %119 = arith.divf %117, %118 : vector<8x128xf32>
    %120 = math.tanh %114 : vector<8x128xf32>
    %121 = vector.extract_strided_slice %119 {offsets = [0, 0], sizes = [8, 32], strides = [1, 1]} : vector<8x128xf32> to vector<8x32xf32>
    %122 = vector.extract_strided_slice %119 {offsets = [0, 32], sizes = [8, 32], strides = [1, 1]} : vector<8x128xf32> to vector<8x32xf32>
    %123 = vector.extract_strided_slice %120 {offsets = [0, 64], sizes = [8, 32], strides = [1, 1]} : vector<8x128xf32> to vector<8x32xf32>
    %124 = vector.extract_strided_slice %119 {offsets = [0, 96], sizes = [8, 32], strides = [1, 1]} : vector<8x128xf32> to vector<8x32xf32>
    %125 = arith.mulf %122, %88 : vector<8x32xf32>
    %126 = arith.mulf %121, %123 : vector<8x32xf32>
    %127 = arith.addf %125, %126 : vector<8x32xf32>
    %128 = math.tanh %127 : vector<8x32xf32>
    %129 = arith.mulf %124, %128 : vector<8x32xf32>
    %c3_i32 = arith.constant 3 : i32
    %c8_i32_31 = arith.constant 8 : i32
    %130 = arith.muli %c3_i32, %c8_i32_31 : i32
    %131 = tpu.assume_multiple %130, 8 : i32
    %132 = arith.index_cast %131 : i32 to index
    %c0_32 = arith.constant 0 : index
    %133 = vector.load %arg9[%132, %c0_32] : memref<64x128xf32, #tpu.memory_space<vmem>>, vector<8x128xf32>
    %cst_33 = arith.constant dense<0.000000e+00> : vector<8x128xf32>
    %134 = tpu.matmul %111, %7, %cst_33 {dimension_numbers = #tpu.dot_dimension_numbers<[1], [0], [0], [1], [0, 0, 1, 1], [], []>} : vector<8x32xf32>, vector<32x128xf32>, vector<8x128xf32> -> vector<8x128xf32>
    %135 = arith.addf %134, %133 : vector<8x128xf32>
    %136 = arith.negf %135 : vector<8x128xf32>
    %137 = math.exp %136 : vector<8x128xf32>
    %cst_34 = arith.constant 1.000000e+00 : f32
    %138 = vector.broadcast %cst_34 : f32 to vector<8x128xf32>
    %139 = arith.addf %138, %137 : vector<8x128xf32>
    %140 = arith.divf %138, %139 : vector<8x128xf32>
    %141 = math.tanh %135 : vector<8x128xf32>
    %142 = vector.extract_strided_slice %140 {offsets = [0, 0], sizes = [8, 32], strides = [1, 1]} : vector<8x128xf32> to vector<8x32xf32>
    %143 = vector.extract_strided_slice %140 {offsets = [0, 32], sizes = [8, 32], strides = [1, 1]} : vector<8x128xf32> to vector<8x32xf32>
    %144 = vector.extract_strided_slice %141 {offsets = [0, 64], sizes = [8, 32], strides = [1, 1]} : vector<8x128xf32> to vector<8x32xf32>
    %145 = vector.extract_strided_slice %140 {offsets = [0, 96], sizes = [8, 32], strides = [1, 1]} : vector<8x128xf32> to vector<8x32xf32>
    %146 = arith.mulf %143, %109 : vector<8x32xf32>
    %147 = arith.mulf %142, %144 : vector<8x32xf32>
    %148 = arith.addf %146, %147 : vector<8x32xf32>
    %149 = math.tanh %148 : vector<8x32xf32>
    %150 = arith.mulf %145, %149 : vector<8x32xf32>
    %151 = tpu.concatenate %150, %129 in 1 : vector<8x32xf32>, vector<8x32xf32> -> vector<8x64xf32>
    %cst_35 = arith.constant dense<0.000000e+00> : vector<8x128xf32>
    %152 = tpu.matmul %151, %8, %cst_35 {dimension_numbers = #tpu.dot_dimension_numbers<[1], [0], [0], [1], [0, 0, 1, 1], [], []>} : vector<8x64xf32>, vector<64x128xf32>, vector<8x128xf32> -> vector<8x128xf32>
    %153 = arith.addf %152, %11 : vector<8x128xf32>
    %154 = arith.negf %153 : vector<8x128xf32>
    %155 = math.exp %154 : vector<8x128xf32>
    %cst_36 = arith.constant 1.000000e+00 : f32
    %156 = vector.broadcast %cst_36 : f32 to vector<8x128xf32>
    %157 = arith.addf %156, %155 : vector<8x128xf32>
    %158 = arith.divf %156, %157 : vector<8x128xf32>
    %159 = math.tanh %153 : vector<8x128xf32>
    %160 = vector.extract_strided_slice %158 {offsets = [0, 0], sizes = [8, 32], strides = [1, 1]} : vector<8x128xf32> to vector<8x32xf32>
    %161 = vector.extract_strided_slice %158 {offsets = [0, 32], sizes = [8, 32], strides = [1, 1]} : vector<8x128xf32> to vector<8x32xf32>
    %162 = vector.extract_strided_slice %159 {offsets = [0, 64], sizes = [8, 32], strides = [1, 1]} : vector<8x128xf32> to vector<8x32xf32>
    %163 = vector.extract_strided_slice %158 {offsets = [0, 96], sizes = [8, 32], strides = [1, 1]} : vector<8x128xf32> to vector<8x32xf32>
    %164 = arith.mulf %161, %127 : vector<8x32xf32>
    %165 = arith.mulf %160, %162 : vector<8x32xf32>
    %166 = arith.addf %164, %165 : vector<8x32xf32>
    %167 = math.tanh %166 : vector<8x32xf32>
    %168 = arith.mulf %163, %167 : vector<8x32xf32>
    %c4_i32 = arith.constant 4 : i32
    %c8_i32_37 = arith.constant 8 : i32
    %169 = arith.muli %c4_i32, %c8_i32_37 : i32
    %170 = tpu.assume_multiple %169, 8 : i32
    %171 = arith.index_cast %170 : i32 to index
    %c0_38 = arith.constant 0 : index
    %172 = vector.load %arg9[%171, %c0_38] : memref<64x128xf32, #tpu.memory_space<vmem>>, vector<8x128xf32>
    %cst_39 = arith.constant dense<0.000000e+00> : vector<8x128xf32>
    %173 = tpu.matmul %150, %7, %cst_39 {dimension_numbers = #tpu.dot_dimension_numbers<[1], [0], [0], [1], [0, 0, 1, 1], [], []>} : vector<8x32xf32>, vector<32x128xf32>, vector<8x128xf32> -> vector<8x128xf32>
    %174 = arith.addf %173, %172 : vector<8x128xf32>
    %175 = arith.negf %174 : vector<8x128xf32>
    %176 = math.exp %175 : vector<8x128xf32>
    %cst_40 = arith.constant 1.000000e+00 : f32
    %177 = vector.broadcast %cst_40 : f32 to vector<8x128xf32>
    %178 = arith.addf %177, %176 : vector<8x128xf32>
    %179 = arith.divf %177, %178 : vector<8x128xf32>
    %180 = math.tanh %174 : vector<8x128xf32>
    %181 = vector.extract_strided_slice %179 {offsets = [0, 0], sizes = [8, 32], strides = [1, 1]} : vector<8x128xf32> to vector<8x32xf32>
    %182 = vector.extract_strided_slice %179 {offsets = [0, 32], sizes = [8, 32], strides = [1, 1]} : vector<8x128xf32> to vector<8x32xf32>
    %183 = vector.extract_strided_slice %180 {offsets = [0, 64], sizes = [8, 32], strides = [1, 1]} : vector<8x128xf32> to vector<8x32xf32>
    %184 = vector.extract_strided_slice %179 {offsets = [0, 96], sizes = [8, 32], strides = [1, 1]} : vector<8x128xf32> to vector<8x32xf32>
    %185 = arith.mulf %182, %148 : vector<8x32xf32>
    %186 = arith.mulf %181, %183 : vector<8x32xf32>
    %187 = arith.addf %185, %186 : vector<8x32xf32>
    %188 = math.tanh %187 : vector<8x32xf32>
    %189 = arith.mulf %184, %188 : vector<8x32xf32>
    %190 = tpu.concatenate %189, %168 in 1 : vector<8x32xf32>, vector<8x32xf32> -> vector<8x64xf32>
    %cst_41 = arith.constant dense<0.000000e+00> : vector<8x128xf32>
    %191 = tpu.matmul %190, %8, %cst_41 {dimension_numbers = #tpu.dot_dimension_numbers<[1], [0], [0], [1], [0, 0, 1, 1], [], []>} : vector<8x64xf32>, vector<64x128xf32>, vector<8x128xf32> -> vector<8x128xf32>
    %192 = arith.addf %191, %11 : vector<8x128xf32>
    %193 = arith.negf %192 : vector<8x128xf32>
    %194 = math.exp %193 : vector<8x128xf32>
    %cst_42 = arith.constant 1.000000e+00 : f32
    %195 = vector.broadcast %cst_42 : f32 to vector<8x128xf32>
    %196 = arith.addf %195, %194 : vector<8x128xf32>
    %197 = arith.divf %195, %196 : vector<8x128xf32>
    %198 = math.tanh %192 : vector<8x128xf32>
    %199 = vector.extract_strided_slice %197 {offsets = [0, 0], sizes = [8, 32], strides = [1, 1]} : vector<8x128xf32> to vector<8x32xf32>
    %200 = vector.extract_strided_slice %197 {offsets = [0, 32], sizes = [8, 32], strides = [1, 1]} : vector<8x128xf32> to vector<8x32xf32>
    %201 = vector.extract_strided_slice %198 {offsets = [0, 64], sizes = [8, 32], strides = [1, 1]} : vector<8x128xf32> to vector<8x32xf32>
    %202 = vector.extract_strided_slice %197 {offsets = [0, 96], sizes = [8, 32], strides = [1, 1]} : vector<8x128xf32> to vector<8x32xf32>
    %203 = arith.mulf %200, %166 : vector<8x32xf32>
    %204 = arith.mulf %199, %201 : vector<8x32xf32>
    %205 = arith.addf %203, %204 : vector<8x32xf32>
    %206 = math.tanh %205 : vector<8x32xf32>
    %207 = arith.mulf %202, %206 : vector<8x32xf32>
    %c5_i32 = arith.constant 5 : i32
    %c8_i32_43 = arith.constant 8 : i32
    %208 = arith.muli %c5_i32, %c8_i32_43 : i32
    %209 = tpu.assume_multiple %208, 8 : i32
    %210 = arith.index_cast %209 : i32 to index
    %c0_44 = arith.constant 0 : index
    %211 = vector.load %arg9[%210, %c0_44] : memref<64x128xf32, #tpu.memory_space<vmem>>, vector<8x128xf32>
    %cst_45 = arith.constant dense<0.000000e+00> : vector<8x128xf32>
    %212 = tpu.matmul %189, %7, %cst_45 {dimension_numbers = #tpu.dot_dimension_numbers<[1], [0], [0], [1], [0, 0, 1, 1], [], []>} : vector<8x32xf32>, vector<32x128xf32>, vector<8x128xf32> -> vector<8x128xf32>
    %213 = arith.addf %212, %211 : vector<8x128xf32>
    %214 = arith.negf %213 : vector<8x128xf32>
    %215 = math.exp %214 : vector<8x128xf32>
    %cst_46 = arith.constant 1.000000e+00 : f32
    %216 = vector.broadcast %cst_46 : f32 to vector<8x128xf32>
    %217 = arith.addf %216, %215 : vector<8x128xf32>
    %218 = arith.divf %216, %217 : vector<8x128xf32>
    %219 = math.tanh %213 : vector<8x128xf32>
    %220 = vector.extract_strided_slice %218 {offsets = [0, 0], sizes = [8, 32], strides = [1, 1]} : vector<8x128xf32> to vector<8x32xf32>
    %221 = vector.extract_strided_slice %218 {offsets = [0, 32], sizes = [8, 32], strides = [1, 1]} : vector<8x128xf32> to vector<8x32xf32>
    %222 = vector.extract_strided_slice %219 {offsets = [0, 64], sizes = [8, 32], strides = [1, 1]} : vector<8x128xf32> to vector<8x32xf32>
    %223 = vector.extract_strided_slice %218 {offsets = [0, 96], sizes = [8, 32], strides = [1, 1]} : vector<8x128xf32> to vector<8x32xf32>
    %224 = arith.mulf %221, %187 : vector<8x32xf32>
    %225 = arith.mulf %220, %222 : vector<8x32xf32>
    %226 = arith.addf %224, %225 : vector<8x32xf32>
    %227 = math.tanh %226 : vector<8x32xf32>
    %228 = arith.mulf %223, %227 : vector<8x32xf32>
    %229 = tpu.concatenate %228, %207 in 1 : vector<8x32xf32>, vector<8x32xf32> -> vector<8x64xf32>
    %cst_47 = arith.constant dense<0.000000e+00> : vector<8x128xf32>
    %230 = tpu.matmul %229, %8, %cst_47 {dimension_numbers = #tpu.dot_dimension_numbers<[1], [0], [0], [1], [0, 0, 1, 1], [], []>} : vector<8x64xf32>, vector<64x128xf32>, vector<8x128xf32> -> vector<8x128xf32>
    %231 = arith.addf %230, %11 : vector<8x128xf32>
    %232 = arith.negf %231 : vector<8x128xf32>
    %233 = math.exp %232 : vector<8x128xf32>
    %cst_48 = arith.constant 1.000000e+00 : f32
    %234 = vector.broadcast %cst_48 : f32 to vector<8x128xf32>
    %235 = arith.addf %234, %233 : vector<8x128xf32>
    %236 = arith.divf %234, %235 : vector<8x128xf32>
    %237 = math.tanh %231 : vector<8x128xf32>
    %238 = vector.extract_strided_slice %236 {offsets = [0, 0], sizes = [8, 32], strides = [1, 1]} : vector<8x128xf32> to vector<8x32xf32>
    %239 = vector.extract_strided_slice %236 {offsets = [0, 32], sizes = [8, 32], strides = [1, 1]} : vector<8x128xf32> to vector<8x32xf32>
    %240 = vector.extract_strided_slice %237 {offsets = [0, 64], sizes = [8, 32], strides = [1, 1]} : vector<8x128xf32> to vector<8x32xf32>
    %241 = vector.extract_strided_slice %236 {offsets = [0, 96], sizes = [8, 32], strides = [1, 1]} : vector<8x128xf32> to vector<8x32xf32>
    %242 = arith.mulf %239, %205 : vector<8x32xf32>
    %243 = arith.mulf %238, %240 : vector<8x32xf32>
    %244 = arith.addf %242, %243 : vector<8x32xf32>
    %245 = math.tanh %244 : vector<8x32xf32>
    %246 = arith.mulf %241, %245 : vector<8x32xf32>
    %c6_i32 = arith.constant 6 : i32
    %c8_i32_49 = arith.constant 8 : i32
    %247 = arith.muli %c6_i32, %c8_i32_49 : i32
    %248 = tpu.assume_multiple %247, 8 : i32
    %249 = arith.index_cast %248 : i32 to index
    %c0_50 = arith.constant 0 : index
    %250 = vector.load %arg9[%249, %c0_50] : memref<64x128xf32, #tpu.memory_space<vmem>>, vector<8x128xf32>
    %cst_51 = arith.constant dense<0.000000e+00> : vector<8x128xf32>
    %251 = tpu.matmul %228, %7, %cst_51 {dimension_numbers = #tpu.dot_dimension_numbers<[1], [0], [0], [1], [0, 0, 1, 1], [], []>} : vector<8x32xf32>, vector<32x128xf32>, vector<8x128xf32> -> vector<8x128xf32>
    %252 = arith.addf %251, %250 : vector<8x128xf32>
    %253 = arith.negf %252 : vector<8x128xf32>
    %254 = math.exp %253 : vector<8x128xf32>
    %cst_52 = arith.constant 1.000000e+00 : f32
    %255 = vector.broadcast %cst_52 : f32 to vector<8x128xf32>
    %256 = arith.addf %255, %254 : vector<8x128xf32>
    %257 = arith.divf %255, %256 : vector<8x128xf32>
    %258 = math.tanh %252 : vector<8x128xf32>
    %259 = vector.extract_strided_slice %257 {offsets = [0, 0], sizes = [8, 32], strides = [1, 1]} : vector<8x128xf32> to vector<8x32xf32>
    %260 = vector.extract_strided_slice %257 {offsets = [0, 32], sizes = [8, 32], strides = [1, 1]} : vector<8x128xf32> to vector<8x32xf32>
    %261 = vector.extract_strided_slice %258 {offsets = [0, 64], sizes = [8, 32], strides = [1, 1]} : vector<8x128xf32> to vector<8x32xf32>
    %262 = vector.extract_strided_slice %257 {offsets = [0, 96], sizes = [8, 32], strides = [1, 1]} : vector<8x128xf32> to vector<8x32xf32>
    %263 = arith.mulf %260, %226 : vector<8x32xf32>
    %264 = arith.mulf %259, %261 : vector<8x32xf32>
    %265 = arith.addf %263, %264 : vector<8x32xf32>
    %266 = math.tanh %265 : vector<8x32xf32>
    %267 = arith.mulf %262, %266 : vector<8x32xf32>
    %268 = tpu.concatenate %267, %246 in 1 : vector<8x32xf32>, vector<8x32xf32> -> vector<8x64xf32>
    %cst_53 = arith.constant dense<0.000000e+00> : vector<8x128xf32>
    %269 = tpu.matmul %268, %8, %cst_53 {dimension_numbers = #tpu.dot_dimension_numbers<[1], [0], [0], [1], [0, 0, 1, 1], [], []>} : vector<8x64xf32>, vector<64x128xf32>, vector<8x128xf32> -> vector<8x128xf32>
    %270 = arith.addf %269, %11 : vector<8x128xf32>
    %271 = arith.negf %270 : vector<8x128xf32>
    %272 = math.exp %271 : vector<8x128xf32>
    %cst_54 = arith.constant 1.000000e+00 : f32
    %273 = vector.broadcast %cst_54 : f32 to vector<8x128xf32>
    %274 = arith.addf %273, %272 : vector<8x128xf32>
    %275 = arith.divf %273, %274 : vector<8x128xf32>
    %276 = math.tanh %270 : vector<8x128xf32>
    %277 = vector.extract_strided_slice %275 {offsets = [0, 0], sizes = [8, 32], strides = [1, 1]} : vector<8x128xf32> to vector<8x32xf32>
    %278 = vector.extract_strided_slice %275 {offsets = [0, 32], sizes = [8, 32], strides = [1, 1]} : vector<8x128xf32> to vector<8x32xf32>
    %279 = vector.extract_strided_slice %276 {offsets = [0, 64], sizes = [8, 32], strides = [1, 1]} : vector<8x128xf32> to vector<8x32xf32>
    %280 = vector.extract_strided_slice %275 {offsets = [0, 96], sizes = [8, 32], strides = [1, 1]} : vector<8x128xf32> to vector<8x32xf32>
    %281 = arith.mulf %278, %244 : vector<8x32xf32>
    %282 = arith.mulf %277, %279 : vector<8x32xf32>
    %283 = arith.addf %281, %282 : vector<8x32xf32>
    %284 = math.tanh %283 : vector<8x32xf32>
    %285 = arith.mulf %280, %284 : vector<8x32xf32>
    %c7_i32 = arith.constant 7 : i32
    %c8_i32_55 = arith.constant 8 : i32
    %286 = arith.muli %c7_i32, %c8_i32_55 : i32
    %287 = tpu.assume_multiple %286, 8 : i32
    %288 = arith.index_cast %287 : i32 to index
    %c0_56 = arith.constant 0 : index
    %289 = vector.load %arg9[%288, %c0_56] : memref<64x128xf32, #tpu.memory_space<vmem>>, vector<8x128xf32>
    %cst_57 = arith.constant dense<0.000000e+00> : vector<8x128xf32>
    %290 = tpu.matmul %267, %7, %cst_57 {dimension_numbers = #tpu.dot_dimension_numbers<[1], [0], [0], [1], [0, 0, 1, 1], [], []>} : vector<8x32xf32>, vector<32x128xf32>, vector<8x128xf32> -> vector<8x128xf32>
    %291 = arith.addf %290, %289 : vector<8x128xf32>
    %292 = arith.negf %291 : vector<8x128xf32>
    %293 = math.exp %292 : vector<8x128xf32>
    %cst_58 = arith.constant 1.000000e+00 : f32
    %294 = vector.broadcast %cst_58 : f32 to vector<8x128xf32>
    %295 = arith.addf %294, %293 : vector<8x128xf32>
    %296 = arith.divf %294, %295 : vector<8x128xf32>
    %297 = math.tanh %291 : vector<8x128xf32>
    %298 = vector.extract_strided_slice %296 {offsets = [0, 0], sizes = [8, 32], strides = [1, 1]} : vector<8x128xf32> to vector<8x32xf32>
    %299 = vector.extract_strided_slice %296 {offsets = [0, 32], sizes = [8, 32], strides = [1, 1]} : vector<8x128xf32> to vector<8x32xf32>
    %300 = vector.extract_strided_slice %297 {offsets = [0, 64], sizes = [8, 32], strides = [1, 1]} : vector<8x128xf32> to vector<8x32xf32>
    %301 = vector.extract_strided_slice %296 {offsets = [0, 96], sizes = [8, 32], strides = [1, 1]} : vector<8x128xf32> to vector<8x32xf32>
    %302 = arith.mulf %299, %265 : vector<8x32xf32>
    %303 = arith.mulf %298, %300 : vector<8x32xf32>
    %304 = arith.addf %302, %303 : vector<8x32xf32>
    %305 = math.tanh %304 : vector<8x32xf32>
    %306 = arith.mulf %301, %305 : vector<8x32xf32>
    %307 = tpu.concatenate %306, %285 in 1 : vector<8x32xf32>, vector<8x32xf32> -> vector<8x64xf32>
    %cst_59 = arith.constant dense<0.000000e+00> : vector<8x128xf32>
    %308 = tpu.matmul %307, %8, %cst_59 {dimension_numbers = #tpu.dot_dimension_numbers<[1], [0], [0], [1], [0, 0, 1, 1], [], []>} : vector<8x64xf32>, vector<64x128xf32>, vector<8x128xf32> -> vector<8x128xf32>
    %309 = arith.addf %308, %11 : vector<8x128xf32>
    %310 = arith.negf %309 : vector<8x128xf32>
    %311 = math.exp %310 : vector<8x128xf32>
    %cst_60 = arith.constant 1.000000e+00 : f32
    %312 = vector.broadcast %cst_60 : f32 to vector<8x128xf32>
    %313 = arith.addf %312, %311 : vector<8x128xf32>
    %314 = arith.divf %312, %313 : vector<8x128xf32>
    %315 = math.tanh %309 : vector<8x128xf32>
    %316 = vector.extract_strided_slice %314 {offsets = [0, 0], sizes = [8, 32], strides = [1, 1]} : vector<8x128xf32> to vector<8x32xf32>
    %317 = vector.extract_strided_slice %314 {offsets = [0, 32], sizes = [8, 32], strides = [1, 1]} : vector<8x128xf32> to vector<8x32xf32>
    %318 = vector.extract_strided_slice %315 {offsets = [0, 64], sizes = [8, 32], strides = [1, 1]} : vector<8x128xf32> to vector<8x32xf32>
    %319 = vector.extract_strided_slice %314 {offsets = [0, 96], sizes = [8, 32], strides = [1, 1]} : vector<8x128xf32> to vector<8x32xf32>
    %320 = arith.mulf %317, %283 : vector<8x32xf32>
    %321 = arith.mulf %316, %318 : vector<8x32xf32>
    %322 = arith.addf %320, %321 : vector<8x32xf32>
    %323 = math.tanh %322 : vector<8x32xf32>
    %324 = arith.mulf %319, %323 : vector<8x32xf32>
    %c8_i32_61 = arith.constant 8 : i32
    %cst_62 = arith.constant 0.000000e+00 : f32
    %325 = vector.broadcast %cst_62 : f32 to vector<8x32xf32>
    %326 = arith.maximumf %324, %325 : vector<8x32xf32>
    %c0_63 = arith.constant 0 : index
    %c0_64 = arith.constant 0 : index
    %327 = vector.load %arg6[%c0_63, %c0_64] : memref<32x4xf32, #tpu.memory_space<vmem>>, vector<32x4xf32>
    %cst_65 = arith.constant dense<0.000000e+00> : vector<8x4xf32>
    %328 = tpu.matmul %326, %327, %cst_65 {dimension_numbers = #tpu.dot_dimension_numbers<[1], [0], [0], [1], [0, 0, 1, 1], [], []>} : vector<8x32xf32>, vector<32x4xf32>, vector<8x4xf32> -> vector<8x4xf32>
    %c0_66 = arith.constant 0 : index
    %c0_67 = arith.constant 0 : index
    %329 = vector.load %arg7[%c0_66, %c0_67] : memref<1x4xf32, #tpu.memory_space<vmem>>, vector<1x4xf32>
    %330 = vector.broadcast %329 : vector<1x4xf32> to vector<8x4xf32>
    %331 = arith.addf %328, %330 : vector<8x4xf32>
    %332 = arith.negf %331 : vector<8x4xf32>
    %333 = math.exp %332 : vector<8x4xf32>
    %cst_68 = arith.constant 1.000000e+00 : f32
    %334 = vector.broadcast %cst_68 : f32 to vector<8x4xf32>
    %335 = arith.addf %334, %333 : vector<8x4xf32>
    %336 = arith.divf %334, %335 : vector<8x4xf32>
    %c0_69 = arith.constant 0 : index
    %c0_70 = arith.constant 0 : index
    %337 = vector.load %arg8[%c0_69, %c0_70] : memref<8x4xf32, #tpu.memory_space<vmem>>, vector<8x4xf32>
    tpu.vector_store %arg8[%c0_69, %c0_70], %336 {strides = array<i32>} : memref<8x4xf32, #tpu.memory_space<vmem>>, vector<8x4xf32>,
    return
  }
}

</mosaic_0001>

<bundles_post_ra>
// kernel: lstm_model_pallas.1
= control target key start
LH: loop header
LB: loop body
LE: loop exit
PB: predicated region body
PF: predicated region fallthrough
CT: control target
= control target key end

     0   :  { %vm67_vm0 = vcmask 1043456   ;;  %vm42_vm1 = vcmask 31744   ;;  %v1414_v6 = vmov 0.0   ;;  %s1415_s17 = smov 64   ;;  %s1416_s18 = smov 32   ;;  %vm137_vm6 = vcmask 261120   ;;  %s1848_s2 = inlined_call_operand.vmem [shape: f32[32,128], index: 2, kind: input, shape index: {}]   ;;  %s1849_s1 = inlined_call_operand.vmem [shape: f32[4,128], index: 1, kind: input, shape index: {}]   ;;  %s1850_s0 = inlined_call_operand.vmem [shape: f32[64,4], index: 0, kind: input, shape index: {}]   ;;  %s1851_s3 = inlined_call_operand.vmem [shape: f32[1,128], index: 3, kind: input, shape index: {}]   ;;  %s1852_s4 = inlined_call_operand.vmem [shape: f32[64,128], index: 4, kind: input, shape index: {}]   ;;  %s1853_s5 = inlined_call_operand.vmem [shape: f32[1,128], index: 5, kind: input, shape index: {}]   ;;  %s1854_s6 = inlined_call_operand.vmem [shape: f32[32,4], index: 6, kind: input, shape index: {}]   ;;  %s1855_s7 = inlined_call_operand.vmem [shape: f32[1,4], index: 7, kind: input, shape index: {}]   ;;  %s1856_s8 = inlined_call_operand.vmem [shape: f32[8,4], index: 8, kind: output, shape index: {}]  }
   0x1   :  { %v1465_v0 = vld [vmem:[%s1848_s2 + $0x18] sm:$0xff]  ;;  %v1470_v1 = vld [vmem:[%s1848_s2 + $0x10] sm:$0xff]  ;;  %v37_v2 = vld [vmem:[%s1849_s1] sm:$0xf]  ;;  %vm203_vm7 = vcmask 523264  }
   0x2   :  { %153 = vmatpush.msra.mxu1 %v1465_v0  ;;  %1232 = vmatpush.msk.msra.mxu0 %vm67_vm0, %v37_v2  ;;  %v29_v3 = vld [vmem:[%s1850_s0] sm:$0xff]  ;;  %v1482_v4 = vld [vmem:[%s1848_s2 + $0x8] sm:$0xff]  ;;  %v1516_v32 = vld [vmem:[%s1852_s4 + $0x38] sm:$0xff] }
   0x3   :  { %1233 = vmatmul.msk.f32.vlgmr.msra.gmra.mxu0 %vm42_vm1, %v29_v3  ;;  %280 = vmatpush.msra.mxu3 %v1465_v0  ;;  %v1490_v5 = vld [vmem:[%s1848_s2] sm:$0xff]  ;;  %v1521_v33 = vld [vmem:[%s1852_s4 + $0x30] sm:$0xff]  ;;  %v1528_v34 = vld [vmem:[%s1852_s4 + $0x28] sm:$0xff] }
   0x4   :  { %154 = vmatpush.msra.mxu1 %v1470_v1  ;;  %v1504_v7 = vld [vmem:[%s1851_s3] ss:$0 sm:$0xff]  ;;  %215 = vmatpush.msra.mxu2 %v1516_v32  ;;  %v1544_v36 = vld [vmem:[%s1852_s4 + $0x18] sm:$0xff]  ;;  %v1552_v37 = vld [vmem:[%s1852_s4 + $0x10] sm:$0xff] }
   0x5   :  { %281 = vmatpush.msra.mxu3 %v1470_v1  ;;  %1125 = vmatpush.msrb.mxu0 %v1516_v32  ;;  %v1536_v35 = vld [vmem:[%s1852_s4 + $0x20] sm:$0xff]  ;;  %v1560_v38 = vld [vmem:[%s1852_s4 + $0x8] sm:$0xff] }
   0x6   :  { %155 = vmatpush.msra.mxu1 %v1482_v4  ;;  %216 = vmatpush.msra.mxu2 %v1521_v33  ;;  %v1573_v41 = vld [vmem:[%s1852_s4] sm:$0xff]  ;;  %v30_v42 = vld [vmem:[%s1850_s0 + $0x8] sm:$0xff] }
   0x7   :  { %282 = vmatpush.msra.mxu3 %v1482_v4  ;;  %1126 = vmatpush.msrb.mxu0 %v1521_v33  ;;  %v1617_v49 = vld [vmem:[%s1853_s5] ss:$0 sm:$0xff] }
   0x8   :  { %156 = vmatpush.msra.mxu1 %v1490_v5  ;;  %217 = vmatpush.msra.mxu2 %v1528_v34 }
   0x9   :  { %157 = vmatmul.f32.vlgmr.msra.gmra.mxu1 %v1414_v6  ;;  %283 = vmatpush.msra.mxu3 %v1490_v5 }
   0xa   :  { %345 = vmatpush.msrb.mxu1 %v1516_v32  ;;  %1127 = vmatpush.msrb.mxu0 %v1528_v34 }
   0xb   :  { %410 = vmatpush.msrb.mxu3 %v1465_v0  ;;  %218 = vmatpush.msra.mxu2 %v1536_v35 }
   0xc   :  { %346 = vmatpush.msrb.mxu1 %v1521_v33  ;;  %1128 = vmatpush.msrb.mxu0 %v1536_v35 }
   0xd   :  { %411 = vmatpush.msrb.mxu3 %v1470_v1  ;;  %219 = vmatpush.msra.mxu2 %v1544_v36 }
   0xe   :  { %347 = vmatpush.msrb.mxu1 %v1528_v34  ;;  %1129 = vmatpush.msrb.mxu0 %v1544_v36 }
   0xf   :  { %412 = vmatpush.msrb.mxu3 %v1482_v4  ;;  %220 = vmatpush.msra.mxu2 %v1552_v37 }
  0x10   :  { %348 = vmatpush.msrb.mxu1 %v1536_v35  ;;  %1130 = vmatpush.msrb.mxu0 %v1552_v37 }
  0x11   :  { %413 = vmatpush.msrb.mxu3 %v1490_v5  ;;  %221 = vmatpush.msra.mxu2 %v1560_v38 }
  0x12   :  { %349 = vmatpush.msrb.mxu1 %v1544_v36  ;;  %1131 = vmatpush.msrb.mxu0 %v1560_v38 }
  0x13   :  { %222 = vmatpush.msra.mxu2 %v1573_v41  ;;  %1234 = vmatmul.msk.f32.gmra.mxu0 %vm42_vm1, %v30_v42 }
  0x14   :  { %350 = vmatpush.msrb.mxu1 %v1552_v37  ;;  %1132 = vmatpush.msrb.mxu0 %v1573_v41 }
  0x15   :  { %475 = vmatpush.msrb.mxu2 %v1516_v32 }
  0x16   :  { %351 = vmatpush.msrb.mxu1 %v1560_v38 }
  0x17   :  { %476 = vmatpush.msrb.mxu2 %v1521_v33 }
  0x18   :  { %352 = vmatpush.msrb.mxu1 %v1573_v41 }
  0x19   :  { %477 = vmatpush.msrb.mxu2 %v1528_v34 }
  0x1a   :  { %605 = vmatpush.msra.mxu1 %v1516_v32 }
  0x1b   :  { %478 = vmatpush.msrb.mxu2 %v1536_v35 }
  0x1c   :  { %606 = vmatpush.msra.mxu1 %v1521_v33 }
  0x1d   :  { %479 = vmatpush.msrb.mxu2 %v1544_v36 }
  0x1e   :  { %607 = vmatpush.msra.mxu1 %v1528_v34 }
  0x1f   :  { %480 = vmatpush.msrb.mxu2 %v1552_v37 }
  0x20   :  { %608 = vmatpush.msra.mxu1 %v1536_v35 }
  0x21   :  { %481 = vmatpush.msrb.mxu2 %v1560_v38 }
  0x22   :  { %609 = vmatpush.msra.mxu1 %v1544_v36 }
  0x23   :  { %482 = vmatpush.msrb.mxu2 %v1573_v41 }
  0x24   :  { %610 = vmatpush.msra.mxu1 %v1552_v37 }
  0x26   :  { %611 = vmatpush.msra.mxu1 %v1560_v38 }
  0x28   :  { %612 = vmatpush.msra.mxu1 %v1573_v41 }
  0x80   :  { %v88_v8 = vpop.f32.mrf.mxu0 }
  0x81   :  { %v89_v9 = vadd.f32 %v1504_v7, %v88_v8 }
  0x86   :  { %v158_v10 = vpop.f32.mrf.mxu1 }
  0x87   :  { %v159_v11 = vadd.f32 %v158_v10, %v89_v9 }
  0x89   :  { %1280 = vtanh.f32 %v159_v11  ;;  %v1241_v13 = vmul.f32 -1.442695, %v159_v11 }
  0x8b   :  { %1282 = vpow2.f32 %v1241_v13 }
  0x8f   :  { %v1281_v12 = vpop.eup %1280 }
  0x90   :  { %183 = vrot.lane.b32.xlu0 %v1281_v12, %s1415_s17  ;;  %v91_v45 = vpop.f32.mrf.mxu0 }
  0x91   :  { %v1283_v14 = vpop.eup %1282  ;;  %v92_v46 = vadd.f32 %v1504_v7, %v91_v45  ;;  %v31_v45 = vld [vmem:[%s1850_s0 + $0x10] sm:$0xff] }
  0x92   :  { %v164_v15 = vadd.f32 1.0, %v1283_v14  ;;  %1235 = vmatmul.msk.f32.gmra.mxu0 %vm42_vm1, %v31_v45 }
  0x94   :  { %1284 = vrcp.f32 %v164_v15  ;;  %v176_v21 = vand.u32 2147483648, %v164_v15  ;;  %vm170_vm3 = vweird.f32 %v164_v15  ;;  %v174_v22 = vand.u32 2147483647, %v164_v15 }
  0x96   :  { %v177_v24 = vor.u32 1.1754944e-38, %v176_v21  ;;  %vm175_vm5 = vcmp.eq.f32.partialorder %v174_v22, 8.507059e+37 }
  0x9a   :  { %v1285_v16 = vpop.eup %1284 }
  0x9b   :  { %v166_v17 = vmul.f32 %v1285_v16, %v164_v15  ;;  %vm171_vm2 = vweird.f32 %v1285_v16 }
  0x9c   :  { %vm172_vm4 = vmor %vm170_vm3, %vm171_vm2 }
  0x9d   :  { %v167_v18 = vsub.f32 1.0, %v166_v17 }
  0x9f   :  { %v168_v19 = vmul.f32 %v1285_v16, %v167_v18 }
  0xa1   :  { %v169_v20 = vadd.f32 %v1285_v16, %v168_v19 }
  0xa3   :  { %v173_v23 = vsel %vm172_vm4, %v1285_v16, %v169_v20 }
  0xa4   :  { %v178_v26 = vsel %vm175_vm5, %v177_v24, %v173_v23 }
  0xa5   :  { %v181_v28 = vmul.f32 0.0, %v178_v26 }
 0x102   :  { %v184_v25 = vpop.permute.xlu0 %183 }
 0x103   :  { %v186_v27 = vmul.f32 %v184_v25, %v178_v26 }
 0x105   :  { %188 = vrot.lane.b32.xlu0 %v186_v27, %s1416_s18 }
 0x177   :  { %v189_v29 = vpop.permute.xlu0 %188 }
 0x178   :  { %v1509_v30 = vadd.f32 %v189_v29, %v181_v28 }
 0x17a   :  { %1286 = vtanh.f32 %v1509_v30 }
 0x180   :  { %v1287_v31 = vpop.eup %1286 }
 0x181   :  { %194 = vrot.lane.b32.xlu1 %v1287_v31, %s1415_s17 }
 0x1f3   :  { %v195_v39 = vpop.permute.xlu1 %194 }
 0x1f4   :  { %v197_v40 = vmul.f32 %v195_v39, %v178_v26 }
 0x1f6   :  { %199 = vrot.lane.b32.xlu1 %v197_v40, %s1416_s18 }
 0x268   :  { %v200_v43 = vpop.permute.xlu1 %199 }
 0x269   :  { %1244 = vmatmul.msk.f32.vlgmr.msra.gmra.mxu3 %vm137_vm6, %v200_v43  ;;  %v202_v44 = vsel %vm137_vm6, %v200_v43, 0.0 }
 0x26a   :  { %1242 = vmatmul.msk.f32.vlgmr.msra.gmra.mxu2 %vm203_vm7, %v202_v44  ;;  %540 = vmatpush.msra.mxu3 %v1465_v0 }
 0x26b   :  { %735 = vmatpush.msra.mxu2 %v1516_v32 }
 0x26c   :  { %541 = vmatpush.msra.mxu3 %v1470_v1 }
 0x26d   :  { %736 = vmatpush.msra.mxu2 %v1521_v33 }
 0x26e   :  { %542 = vmatpush.msra.mxu3 %v1482_v4 }
 0x26f   :  { %737 = vmatpush.msra.mxu2 %v1528_v34 }
 0x270   :  { %543 = vmatpush.msra.mxu3 %v1490_v5 }
 0x271   :  { %738 = vmatpush.msra.mxu2 %v1536_v35 }
 0x273   :  { %739 = vmatpush.msra.mxu2 %v1544_v36 }
 0x275   :  { %740 = vmatpush.msra.mxu2 %v1552_v37 }
 0x277   :  { %741 = vmatpush.msra.mxu2 %v1560_v38 }
 0x279   :  { %742 = vmatpush.msra.mxu2 %v1573_v41 }
 0x2ec   :  { %v285_v47 = vpop.f32.mrf.mxu3 }
 0x2ed   :  { %v286_v48 = vadd.f32 %v285_v47, %v92_v46  ;;  %v224_v50 = vpop.f32.mrf.mxu2 }
 0x2ee   :  { %v225_v51 = vadd.f32 %v1617_v49, %v224_v50  ;;  %v94_v50 = vpop.f32.mrf.mxu0 }
 0x2ef   :  { %1288 = vtanh.f32 %v286_v48  ;;  %v1245_v54 = vmul.f32 -1.442695, %v286_v48 }
 0x2f0   :  { %1290 = vtanh.f32 %v225_v51  ;;  %v1243_v55 = vmul.f32 -1.442695, %v225_v51  ;;  %v95_v51 = vadd.f32 %v1504_v7, %v94_v50 }
 0x2f1   :  { %1292 = vpow2.f32 %v1245_v54 }
 0x2f2   :  { %1294 = vpow2.f32 %v1243_v55 }
 0x2f5   :  { %v1289_v52 = vpop.eup %1288 }
 0x2f6   :  { %310 = vrot.lane.b32.xlu2 %v1289_v52, %s1415_s17  ;;  %v1291_v53 = vpop.eup %1290 }
 0x2f7   :  { %v1293_v56 = vpop.eup %1292 }
 0x2f8   :  { %v291_v57 = vadd.f32 1.0, %v1293_v56  ;;  %v1295_v58 = vpop.eup %1294 }
 0x2f9   :  { %v230_v59 = vadd.f32 1.0, %v1295_v58 }
 0x2fa   :  { %1296 = vrcp.f32 %v291_v57  ;;  %v303_v9 = vand.u32 2147483648, %v291_v57  ;;  %vm297_vm9 = vweird.f32 %v291_v57  ;;  %v301_v10 = vand.u32 2147483647, %v291_v57 }
 0x2fb   :  { %1298 = vrcp.f32 %v230_v59  ;;  %v242_v18 = vand.u32 2147483648, %v230_v59  ;;  %vm236_vm13 = vweird.f32 %v230_v59  ;;  %v240_v19 = vand.u32 2147483647, %v230_v59 }
 0x2fc   :  { %v304_v13 = vor.u32 1.1754944e-38, %v303_v9  ;;  %vm302_vm11 = vcmp.eq.f32.partialorder %v301_v10, 8.507059e+37 }
 0x2fd   :  { %v243_v21 = vor.u32 1.1754944e-38, %v242_v18  ;;  %vm241_vm15 = vcmp.eq.f32.partialorder %v240_v19, 8.507059e+37 }
 0x2fe   :  { %249 = vrot.lane.b32.xlu2 %v1291_v53, %s1415_s17 }
 0x300   :  { %v1297_v60 = vpop.eup %1296 }
 0x301   :  { %v293_v61 = vmul.f32 %v1297_v60, %v291_v57  ;;  %v1299_v63 = vpop.eup %1298  ;;  %vm298_vm8 = vweird.f32 %v1297_v60 }
 0x302   :  { %v232_v3 = vmul.f32 %v1299_v63, %v230_v59  ;;  %vm299_vm10 = vmor %vm297_vm9, %vm298_vm8  ;;  %vm237_vm12 = vweird.f32 %v1299_v63 }
 0x303   :  { %v294_v62 = vsub.f32 1.0, %v293_v61  ;;  %vm238_vm14 = vmor %vm236_vm13, %vm237_vm12 }
 0x304   :  { %v233_v8 = vsub.f32 1.0, %v232_v3 }
 0x305   :  { %v295_v2 = vmul.f32 %v1297_v60, %v294_v62 }
 0x306   :  { %v234_v12 = vmul.f32 %v1299_v63, %v233_v8 }
 0x307   :  { %v296_v6 = vadd.f32 %v1297_v60, %v295_v2 }
 0x308   :  { %v235_v17 = vadd.f32 %v1299_v63, %v234_v12 }
 0x309   :  { %v300_v11 = vsel %vm299_vm10, %v1297_v60, %v296_v6 }
 0x30a   :  { %v305_v15 = vsel %vm302_vm11, %v304_v13, %v300_v11  ;;  %v239_v20 = vsel %vm238_vm14, %v1299_v63, %v235_v17 }
 0x30b   :  { %v244_v23 = vsel %vm241_vm15, %v243_v21, %v239_v20  ;;  %v308_v25 = vmul.f32 %v305_v15, %v1509_v30 }
 0x30c   :  { %v247_v28 = vmul.f32 0.0, %v244_v23 }
 0x350   :  { %v311_v14 = vpop.permute.xlu2 %310 }
 0x351   :  { %v313_v16 = vmul.f32 %v311_v14, %v305_v15 }
 0x353   :  { %315 = vrot.lane.b32.xlu0 %v313_v16, %s1416_s18 }
 0x358   :  { %v250_v22 = vpop.permute.xlu2 %249 }
 0x359   :  { %v252_v24 = vmul.f32 %v250_v22, %v244_v23 }
 0x35b   :  { %254 = vrot.lane.b32.xlu1 %v252_v24, %s1416_s18 }
 0x3c5   :  { %v316_v26 = vpop.permute.xlu0 %315 }
 0x3c6   :  { %v1625_v27 = vadd.f32 %v316_v26, %v308_v25 }
 0x3c8   :  { %1300 = vtanh.f32 %v1625_v27 }
 0x3cd   :  { %v255_v29 = vpop.permute.xlu1 %254 }
 0x3ce   :  { %v1301_v31 = vpop.eup %1300  ;;  %v1628_v39 = vadd.f32 %v255_v29, %v247_v28 }
 0x3cf   :  { %321 = vrot.lane.b32.xlu2 %v1301_v31, %s1415_s17 }
 0x3d0   :  { %1302 = vtanh.f32 %v1628_v39 }
 0x3d6   :  { %v1303_v40 = vpop.eup %1302 }
 0x3d7   :  { %260 = vrot.lane.b32.xlu0 %v1303_v40, %s1415_s17 }
 0x429   :  { %v322_v42 = vpop.permute.xlu2 %321 }
 0x42a   :  { %v324_v43 = vmul.f32 %v322_v42, %v305_v15 }
 0x42c   :  { %326 = vrot.lane.b32.xlu1 %v324_v43, %s1416_s18 }
 0x449   :  { %v261_v30 = vpop.permute.xlu0 %260 }
 0x44a   :  { %v263_v44 = vmul.f32 %v261_v30, %v244_v23 }
 0x44c   :  { %330 = vrot.lane.b32.xlu2 %v263_v44, %s1415_s17 }
 0x49e   :  { %v327_v46 = vpop.permute.xlu1 %326 }
 0x49f   :  { %1248 = vmatmul.msk.f32.vlgmr.msrb.gmra.mxu3 %vm137_vm6, %v327_v46 }
 0x4a0   :  { %670 = vmatpush.msrb.mxu3 %v1465_v0 }
 0x4a2   :  { %671 = vmatpush.msrb.mxu3 %v1470_v1 }
 0x4a4   :  { %672 = vmatpush.msrb.mxu3 %v1482_v4 }
 0x4a6   :  { %v331_v47 = vpop.permute.xlu2 %330  ;;  %673 = vmatpush.msrb.mxu3 %v1490_v5 }
 0x4a7   :  { %v333_v48 = vsel %vm137_vm6, %v327_v46, %v331_v47 }
 0x4a8   :  { %1246 = vmatmul.msk.f32.vlgmr.msrb.gmra.mxu1 %vm203_vm7, %v333_v48 }
 0x4a9   :  { %865 = vmatpush.msrb.mxu1 %v1516_v32 }
 0x4ab   :  { %866 = vmatpush.msrb.mxu1 %v1521_v33 }
 0x4ad   :  { %867 = vmatpush.msrb.mxu1 %v1528_v34 }
 0x4af   :  { %868 = vmatpush.msrb.mxu1 %v1536_v35 }
 0x4b1   :  { %869 = vmatpush.msrb.mxu1 %v1544_v36 }
 0x4b3   :  { %870 = vmatpush.msrb.mxu1 %v1552_v37 }
 0x4b5   :  { %871 = vmatpush.msrb.mxu1 %v1560_v38 }
 0x4b7   :  { %872 = vmatpush.msrb.mxu1 %v1573_v41 }
 0x522   :  { %v415_v52 = vpop.f32.mrf.mxu3 }
 0x523   :  { %v416_v53 = vadd.f32 %v415_v52, %v95_v51 }
 0x525   :  { %1304 = vtanh.f32 %v416_v53  ;;  %v354_v54 = vpop.f32.mrf.mxu1  ;;  %v1249_v58 = vmul.f32 -1.442695, %v416_v53 }
 0x526   :  { %v355_v55 = vadd.f32 %v1617_v49, %v354_v54 }
 0x528   :  { %1306 = vtanh.f32 %v355_v55  ;;  %v1247_v59 = vmul.f32 -1.442695, %v355_v55 }
 0x529   :  { %1308 = vpow2.f32 %v1249_v58 }
 0x52a   :  { %1310 = vpow2.f32 %v1247_v59 }
 0x52b   :  { %v1305_v56 = vpop.eup %1304 }
 0x52c   :  { %440 = vrot.lane.b32.xlu0 %v1305_v56, %s1415_s17 }
 0x52e   :  { %v1307_v57 = vpop.eup %1306 }
 0x52f   :  { %379 = vrot.lane.b32.xlu1 %v1307_v57, %s1415_s17  ;;  %v1309_v60 = vpop.eup %1308 }
 0x530   :  { %v1311_v61 = vpop.eup %1310  ;;  %v421_v62 = vadd.f32 1.0, %v1309_v60 }
 0x531   :  { %v360_v63 = vadd.f32 1.0, %v1311_v61 }
 0x532   :  { %1312 = vrcp.f32 %v421_v62  ;;  %v433_v14 = vand.u32 2147483648, %v421_v62  ;;  %vm427_vm2 = vweird.f32 %v421_v62  ;;  %v431_v15 = vand.u32 2147483647, %v421_v62 }
 0x533   :  { %1314 = vrcp.f32 %v360_v63  ;;  %v372_v18 = vand.u32 2147483648, %v360_v63  ;;  %vm366_vm5 = vweird.f32 %v360_v63  ;;  %v370_v20 = vand.u32 2147483647, %v360_v63 }
 0x534   :  { %v434_v19 = vor.u32 1.1754944e-38, %v433_v14  ;;  %vm432_vm8 = vcmp.eq.f32.partialorder %v431_v15, 8.507059e+37 }
 0x535   :  { %v373_v25 = vor.u32 1.1754944e-38, %v372_v18  ;;  %vm371_vm10 = vcmp.eq.f32.partialorder %v370_v20, 8.507059e+37 }
 0x538   :  { %v1313_v2 = vpop.eup %1312 }
 0x539   :  { %v1315_v3 = vpop.eup %1314  ;;  %v423_v6 = vmul.f32 %v1313_v2, %v421_v62  ;;  %vm428_vm0 = vweird.f32 %v1313_v2 }
 0x53a   :  { %v362_v8 = vmul.f32 %v1315_v3, %v360_v63  ;;  %vm429_vm3 = vmor %vm427_vm2, %vm428_vm0  ;;  %vm367_vm4 = vweird.f32 %v1315_v3 }
 0x53b   :  { %v424_v9 = vsub.f32 1.0, %v423_v6  ;;  %vm368_vm9 = vmor %vm366_vm5, %vm367_vm4 }
 0x53c   :  { %v363_v10 = vsub.f32 1.0, %v362_v8 }
 0x53d   :  { %v425_v11 = vmul.f32 %v1313_v2, %v424_v9 }
 0x53e   :  { %v364_v12 = vmul.f32 %v1315_v3, %v363_v10 }
 0x53f   :  { %v426_v13 = vadd.f32 %v1313_v2, %v425_v11 }
 0x540   :  { %v365_v16 = vadd.f32 %v1315_v3, %v364_v12 }
 0x541   :  { %v430_v17 = vsel %vm429_vm3, %v1313_v2, %v426_v13 }
 0x542   :  { %v435_v21 = vsel %vm432_vm8, %v434_v19, %v430_v17  ;;  %v369_v23 = vsel %vm368_vm9, %v1315_v3, %v365_v16 }
 0x543   :  { %v374_v28 = vsel %vm371_vm10, %v373_v25, %v369_v23  ;;  %v438_v31 = vmul.f32 %v435_v21, %v1625_v27 }
 0x544   :  { %v377_v30 = vmul.f32 %v374_v28, %v1628_v39  ;;  %v32_v39 = vld [vmem:[%s1850_s0 + $0x18] sm:$0xff] }
 0x545   :  { %1236 = vmatmul.msk.f32.gmra.mxu0 %vm42_vm1, %v32_v39 }
 0x59e   :  { %v441_v22 = vpop.permute.xlu0 %440 }
 0x59f   :  { %v443_v24 = vmul.f32 %v441_v22, %v435_v21 }
 0x5a1   :  { %v380_v26 = vpop.permute.xlu1 %379  ;;  %445 = vrot.lane.b32.xlu2 %v443_v24, %s1416_s18 }
 0x5a2   :  { %v382_v29 = vmul.f32 %v380_v26, %v374_v28 }
 0x5a4   :  { %384 = vrot.lane.b32.xlu0 %v382_v29, %s1416_s18 }
 0x5c2   :  { %v97_v54 = vpop.f32.mrf.mxu0 }
 0x5c3   :  { %v98_v55 = vadd.f32 %v1504_v7, %v97_v54 }
 0x5fb   :  { %v446_v40 = vpop.permute.xlu2 %445 }
 0x5fc   :  { %v1661_v42 = vadd.f32 %v446_v40, %v438_v31 }
 0x5fe   :  { %1316 = vtanh.f32 %v1661_v42 }
 0x604   :  { %v1317_v43 = vpop.eup %1316 }
 0x605   :  { %451 = vrot.lane.b32.xlu1 %v1317_v43, %s1415_s17 }
 0x616   :  { %v385_v44 = vpop.permute.xlu0 %384 }
 0x617   :  { %v1666_v45 = vadd.f32 %v385_v44, %v377_v30 }
 0x619   :  { %1318 = vtanh.f32 %v1666_v45 }
 0x61f   :  { %v1319_v46 = vpop.eup %1318 }
 0x620   :  { %390 = vrot.lane.b32.xlu2 %v1319_v46, %s1415_s17 }
 0x677   :  { %v452_v47 = vpop.permute.xlu1 %451 }
 0x678   :  { %v454_v27 = vmul.f32 %v452_v47, %v435_v21 }
 0x67a   :  { %456 = vrot.lane.b32.xlu0 %v454_v27, %s1416_s18  ;;  %v391_v48 = vpop.permute.xlu2 %390 }
 0x67b   :  { %v393_v50 = vmul.f32 %v391_v48, %v374_v28 }
 0x67d   :  { %460 = vrot.lane.b32.xlu1 %v393_v50, %s1415_s17 }
 0x6ec   :  { %v457_v51 = vpop.permute.xlu0 %456 }
 0x6ed   :  { %1252 = vmatmul.msk.f32.vlgmr.msra.gmra.mxu3 %vm137_vm6, %v457_v51 }
 0x6ee   :  { %800 = vmatpush.msra.mxu3 %v1465_v0 }
 0x6ef   :  { %v461_v52 = vpop.permute.xlu1 %460 }
 0x6f0   :  { %v463_v53 = vsel %vm137_vm6, %v457_v51, %v461_v52  ;;  %801 = vmatpush.msra.mxu3 %v1470_v1 }
 0x6f1   :  { %1250 = vmatmul.msk.f32.vlgmr.msrb.gmra.mxu2 %vm203_vm7, %v463_v53 }
 0x6f2   :  { %802 = vmatpush.msra.mxu3 %v1482_v4  ;;  %995 = vmatpush.msrb.mxu2 %v1516_v32 }
 0x6f4   :  { %803 = vmatpush.msra.mxu3 %v1490_v5  ;;  %996 = vmatpush.msrb.mxu2 %v1521_v33 }
 0x6f6   :  { %997 = vmatpush.msrb.mxu2 %v1528_v34 }
 0x6f8   :  { %998 = vmatpush.msrb.mxu2 %v1536_v35 }
 0x6fa   :  { %999 = vmatpush.msrb.mxu2 %v1544_v36 }
 0x6fc   :  { %1000 = vmatpush.msrb.mxu2 %v1552_v37 }
 0x6fe   :  { %1001 = vmatpush.msrb.mxu2 %v1560_v38 }
 0x700   :  { %1002 = vmatpush.msrb.mxu2 %v1573_v41 }
 0x770   :  { %v545_v32 = vpop.f32.mrf.mxu3 }
 0x771   :  { %v546_v56 = vadd.f32 %v545_v32, %v98_v55 }
 0x773   :  { %1320 = vtanh.f32 %v546_v56  ;;  %v1253_v36 = vmul.f32 -1.442695, %v546_v56 }
 0x774   :  { %v484_v57 = vpop.f32.mrf.mxu2 }
 0x775   :  { %v485_v33 = vadd.f32 %v1617_v49, %v484_v57 }
 0x777   :  { %1322 = vtanh.f32 %v485_v33  ;;  %v1251_v59 = vmul.f32 -1.442695, %v485_v33 }
 0x778   :  { %1324 = vpow2.f32 %v1253_v36 }
 0x779   :  { %v1321_v34 = vpop.eup %1320 }
 0x77a   :  { %570 = vrot.lane.b32.xlu2 %v1321_v34, %s1415_s17 }
 0x77d   :  { %v1323_v35 = vpop.eup %1322 }
 0x77e   :  { %509 = vrot.lane.b32.xlu0 %v1323_v35, %s1415_s17  ;;  %v1325_v37 = vpop.eup %1324 }
 0x77f   :  { %v551_v38 = vadd.f32 1.0, %v1325_v37 }
 0x781   :  { %1326 = vrcp.f32 %v551_v38  ;;  %v563_v2 = vand.u32 2147483648, %v551_v38  ;;  %vm557_vm12 = vweird.f32 %v551_v38  ;;  %v561_v3 = vand.u32 2147483647, %v551_v38 }
 0x782   :  { %1328 = vpow2.f32 %v1251_v59 }
 0x783   :  { %v564_v9 = vor.u32 1.1754944e-38, %v563_v2  ;;  %vm562_vm14 = vcmp.eq.f32.partialorder %v561_v3, 8.507059e+37 }
 0x787   :  { %v1327_v41 = vpop.eup %1326 }
 0x788   :  { %v553_v58 = vmul.f32 %v1327_v41, %v551_v38  ;;  %v1329_v62 = vpop.eup %1328  ;;  %vm558_vm11 = vweird.f32 %v1327_v41 }
 0x789   :  { %v490_v6 = vadd.f32 1.0, %v1329_v62  ;;  %vm559_vm13 = vmor %vm557_vm12, %vm558_vm11 }
 0x78a   :  { %v554_v60 = vsub.f32 1.0, %v553_v58 }
 0x78b   :  { %1330 = vrcp.f32 %v490_v6  ;;  %v502_v18 = vand.u32 2147483648, %v490_v6  ;;  %vm496_vm0 = vweird.f32 %v490_v6  ;;  %v500_v19 = vand.u32 2147483647, %v490_v6 }
 0x78c   :  { %v555_v61 = vmul.f32 %v1327_v41, %v554_v60 }
 0x78d   :  { %v503_v21 = vor.u32 1.1754944e-38, %v502_v18  ;;  %vm501_vm3 = vcmp.eq.f32.partialorder %v500_v19, 8.507059e+37 }
 0x78e   :  { %v556_v63 = vadd.f32 %v1327_v41, %v555_v61 }
 0x790   :  { %v560_v8 = vsel %vm559_vm13, %v1327_v41, %v556_v63 }
 0x791   :  { %v565_v11 = vsel %vm562_vm14, %v564_v9, %v560_v8  ;;  %v1331_v13 = vpop.eup %1330 }
 0x792   :  { %v492_v14 = vmul.f32 %v1331_v13, %v490_v6  ;;  %vm497_vm15 = vweird.f32 %v1331_v13  ;;  %v568_v25 = vmul.f32 %v565_v11, %v1661_v42 }
 0x793   :  { %vm498_vm2 = vmor %vm496_vm0, %vm497_vm15 }
 0x794   :  { %v493_v15 = vsub.f32 1.0, %v492_v14 }
 0x796   :  { %v494_v16 = vmul.f32 %v1331_v13, %v493_v15 }
 0x798   :  { %v495_v17 = vadd.f32 %v1331_v13, %v494_v16 }
 0x79a   :  { %v499_v20 = vsel %vm498_vm2, %v1331_v13, %v495_v17 }
 0x79b   :  { %v504_v23 = vsel %vm501_vm3, %v503_v21, %v499_v20 }
 0x79c   :  { %v507_v29 = vmul.f32 %v504_v23, %v1666_v45  ;;  %v33_v45 = vld [vmem:[%s1850_s0 + $0x20] sm:$0xff] }
 0x79d   :  { %1237 = vmatmul.msk.f32.gmra.mxu0 %vm42_vm1, %v33_v45 }
 0x7d4   :  { %v571_v10 = vpop.permute.xlu2 %570 }
 0x7d5   :  { %v573_v12 = vmul.f32 %v571_v10, %v565_v11 }
 0x7d7   :  { %575 = vrot.lane.b32.xlu1 %v573_v12, %s1416_s18 }
 0x7f0   :  { %v510_v22 = vpop.permute.xlu0 %509 }
 0x7f1   :  { %v512_v24 = vmul.f32 %v510_v22, %v504_v23 }
 0x7f3   :  { %514 = vrot.lane.b32.xlu2 %v512_v24, %s1416_s18 }
 0x81a   :  { %v100_v39 = vpop.f32.mrf.mxu0 }
 0x81b   :  { %v101_v51 = vadd.f32 %v1504_v7, %v100_v39 }
 0x849   :  { %v576_v26 = vpop.permute.xlu1 %575 }
 0x84a   :  { %v1698_v28 = vadd.f32 %v576_v26, %v568_v25 }
 0x84c   :  { %1332 = vtanh.f32 %v1698_v28 }
 0x84d   :  { %v515_v31 = vpop.permute.xlu2 %514 }
 0x84e   :  { %v1702_v40 = vadd.f32 %v515_v31, %v507_v29 }
 0x850   :  { %1334 = vtanh.f32 %v1702_v40 }
 0x852   :  { %v1333_v43 = vpop.eup %1332 }
 0x853   :  { %581 = vrot.lane.b32.xlu0 %v1333_v43, %s1415_s17 }
 0x856   :  { %v1335_v30 = vpop.eup %1334 }
 0x857   :  { %520 = vrot.lane.b32.xlu1 %v1335_v30, %s1415_s17 }
 0x8c5   :  { %v582_v44 = vpop.permute.xlu0 %581 }
 0x8c6   :  { %v584_v42 = vmul.f32 %v582_v44, %v565_v11  ;;  %v34_v44 = vld [vmem:[%s1850_s0 + $0x28] sm:$0xff] }
 0x8c7   :  { %1238 = vmatmul.msk.f32.gmra.mxu0 %vm42_vm1, %v34_v44 }
 0x8c8   :  { %586 = vrot.lane.b32.xlu2 %v584_v42, %s1416_s18 }
 0x8c9   :  { %v521_v46 = vpop.permute.xlu1 %520 }
 0x8ca   :  { %v523_v47 = vmul.f32 %v521_v46, %v504_v23 }
 0x8cc   :  { %590 = vrot.lane.b32.xlu0 %v523_v47, %s1415_s17 }
 0x922   :  { %v587_v27 = vpop.permute.xlu2 %586 }
 0x923   :  { %1256 = vmatmul.msk.f32.vlgmr.msrb.gmra.mxu3 %vm137_vm6, %v587_v27 }
 0x924   :  { %930 = vmatpush.msrb.mxu3 %v1465_v0 }
 0x926   :  { %931 = vmatpush.msrb.mxu3 %v1470_v1 }
 0x928   :  { %932 = vmatpush.msrb.mxu3 %v1482_v4 }
 0x92a   :  { %933 = vmatpush.msrb.mxu3 %v1490_v5 }
 0x93e   :  { %v591_v48 = vpop.permute.xlu0 %590 }
 0x93f   :  { %v593_v50 = vsel %vm137_vm6, %v587_v27, %v591_v48 }
 0x940   :  { %1254 = vmatmul.msk.f32.vlgmr.msra.gmra.mxu1 %vm203_vm7, %v593_v50 }
 0x944   :  { %v103_v45 = vpop.f32.mrf.mxu0 }
 0x945   :  { %v104_v27 = vadd.f32 %v1504_v7, %v103_v45 }
 0x9a6   :  { %v675_v52 = vpop.f32.mrf.mxu3 }
 0x9a7   :  { %v676_v53 = vadd.f32 %v675_v52, %v101_v51 }
 0x9a9   :  { %1336 = vtanh.f32 %v676_v53  ;;  %v1257_v33 = vmul.f32 -1.442695, %v676_v53 }
 0x9af   :  { %v1337_v54 = vpop.eup %1336 }
 0x9b0   :  { %700 = vrot.lane.b32.xlu1 %v1337_v54, %s1415_s17 }
 0x9bd   :  { %v614_v55 = vpop.f32.mrf.mxu1 }
 0x9be   :  { %v615_v32 = vadd.f32 %v1617_v49, %v614_v55 }
 0x9c0   :  { %1338 = vtanh.f32 %v615_v32  ;;  %v1255_v57 = vmul.f32 -1.442695, %v615_v32 }
 0x9c2   :  { %1340 = vpow2.f32 %v1255_v57 }
 0x9c3   :  { %1342 = vpow2.f32 %v1257_v33 }
 0x9c6   :  { %v1339_v56 = vpop.eup %1338 }
 0x9c7   :  { %639 = vrot.lane.b32.xlu2 %v1339_v56, %s1415_s17 }
 0x9c8   :  { %v1341_v34 = vpop.eup %1340 }
 0x9c9   :  { %v1343_v35 = vpop.eup %1342  ;;  %v620_v36 = vadd.f32 1.0, %v1341_v34 }
 0x9ca   :  { %v681_v37 = vadd.f32 1.0, %v1343_v35 }
 0x9cb   :  { %1344 = vrcp.f32 %v620_v36  ;;  %v632_v3 = vand.u32 2147483648, %v620_v36  ;;  %vm626_vm8 = vweird.f32 %v620_v36  ;;  %v630_v8 = vand.u32 2147483647, %v620_v36 }
 0x9cc   :  { %1346 = vrcp.f32 %v681_v37  ;;  %v693_v9 = vand.u32 2147483648, %v681_v37  ;;  %vm687_vm10 = vweird.f32 %v681_v37  ;;  %v691_v10 = vand.u32 2147483647, %v681_v37 }
 0x9cd   :  { %v633_v12 = vor.u32 1.1754944e-38, %v632_v3  ;;  %vm631_vm12 = vcmp.eq.f32.partialorder %v630_v8, 8.507059e+37 }
 0x9ce   :  { %v694_v14 = vor.u32 1.1754944e-38, %v693_v9  ;;  %vm692_vm13 = vcmp.eq.f32.partialorder %v691_v10, 8.507059e+37 }
 0x9d1   :  { %v1345_v38 = vpop.eup %1344 }
 0x9d2   :  { %v1347_v41 = vpop.eup %1346  ;;  %v622_v58 = vmul.f32 %v1345_v38, %v620_v36  ;;  %vm627_vm4 = vweird.f32 %v1345_v38 }
 0x9d3   :  { %v683_v59 = vmul.f32 %v1347_v41, %v681_v37  ;;  %vm688_vm5 = vweird.f32 %v1347_v41  ;;  %vm628_vm9 = vmor %vm626_vm8, %vm627_vm4 }
 0x9d4   :  { %v623_v60 = vsub.f32 1.0, %v622_v58  ;;  %vm689_vm11 = vmor %vm687_vm10, %vm688_vm5 }
 0x9d5   :  { %v684_v61 = vsub.f32 1.0, %v683_v59 }
 0x9d6   :  { %v624_v62 = vmul.f32 %v1345_v38, %v623_v60 }
 0x9d7   :  { %v685_v63 = vmul.f32 %v1347_v41, %v684_v61 }
 0x9d8   :  { %v625_v2 = vadd.f32 %v1345_v38, %v624_v62 }
 0x9d9   :  { %v686_v6 = vadd.f32 %v1347_v41, %v685_v63 }
 0x9da   :  { %v629_v11 = vsel %vm628_vm9, %v1345_v38, %v625_v2 }
 0x9db   :  { %v690_v13 = vsel %vm689_vm11, %v1347_v41, %v686_v6  ;;  %v634_v16 = vsel %vm631_vm12, %v633_v12, %v629_v11 }
 0x9dc   :  { %v695_v18 = vsel %vm692_vm13, %v694_v14, %v690_v13  ;;  %v637_v21 = vmul.f32 %v634_v16, %v1702_v40 }
 0x9dd   :  { %v698_v23 = vmul.f32 %v695_v18, %v1698_v28 }
 0xa21   :  { %v640_v15 = vpop.permute.xlu2 %639 }
 0xa22   :  { %v642_v17 = vmul.f32 %v640_v15, %v634_v16  ;;  %v701_v19 = vpop.permute.xlu1 %700 }
 0xa23   :  { %v703_v20 = vmul.f32 %v701_v19, %v695_v18 }
 0xa24   :  { %644 = vrot.lane.b32.xlu1 %v642_v17, %s1416_s18 }
 0xa25   :  { %705 = vrot.lane.b32.xlu0 %v703_v20, %s1416_s18 }
 0xa96   :  { %v645_v22 = vpop.permute.xlu1 %644 }
 0xa97   :  { %v1728_v24 = vadd.f32 %v645_v22, %v637_v21  ;;  %v706_v25 = vpop.permute.xlu0 %705 }
 0xa98   :  { %v1730_v26 = vadd.f32 %v706_v25, %v698_v23 }
 0xa99   :  { %1348 = vtanh.f32 %v1728_v24 }
 0xa9a   :  { %1350 = vtanh.f32 %v1730_v26 }
 0xa9f   :  { %v1349_v29 = vpop.eup %1348 }
 0xaa0   :  { %v1351_v31 = vpop.eup %1350  ;;  %650 = vrot.lane.b32.xlu0 %v1349_v29, %s1415_s17 }
 0xaa1   :  { %711 = vrot.lane.b32.xlu2 %v1351_v31, %s1415_s17 }
 0xafb   :  { %v712_v43 = vpop.permute.xlu2 %711 }
 0xafc   :  { %v714_v40 = vmul.f32 %v712_v43, %v695_v18 }
 0xafe   :  { %716 = vrot.lane.b32.xlu1 %v714_v40, %s1416_s18 }
 0xb12   :  { %v651_v28 = vpop.permute.xlu0 %650 }
 0xb13   :  { %v653_v30 = vmul.f32 %v651_v28, %v634_v16  ;;  %v1778_v28 = vld [vmem:[%s1851_s3] ss:$0 sm:$0xff] }
 0xb15   :  { %720 = vrot.lane.b32.xlu2 %v653_v30, %s1415_s17 }
 0xb6f   :  { %v721_v42 = vpop.permute.xlu2 %720 }
 0xb70   :  { %v717_v46 = vpop.permute.xlu1 %716 }
 0xb71   :  { %v723_v47 = vsel %vm137_vm6, %v717_v46, %v721_v42  ;;  %1260 = vmatmul.msk.f32.vlgmr.msra.gmra.mxu3 %vm137_vm6, %v717_v46 }
 0xb72   :  { %1258 = vmatmul.msk.f32.vlgmr.msra.gmra.mxu2 %vm203_vm7, %v723_v47  ;;  %1060 = vmatpush.msra.mxu3 %v1465_v0 }
 0xb74   :  { %1061 = vmatpush.msra.mxu3 %v1470_v1 }
 0xb76   :  { %1062 = vmatpush.msra.mxu3 %v1482_v4 }
 0xb78   :  { %1063 = vmatpush.msra.mxu3 %v1490_v5 }
 0xbf4   :  { %v805_v48 = vpop.f32.mrf.mxu3 }
 0xbf5   :  { %v806_v50 = vadd.f32 %v805_v48, %v104_v27  ;;  %v744_v39 = vpop.f32.mrf.mxu2 }
 0xbf6   :  { %v745_v51 = vadd.f32 %v1617_v49, %v744_v39 }
 0xbf7   :  { %1352 = vtanh.f32 %v806_v50  ;;  %v1261_v0 = vmul.f32 -1.442695, %v806_v50 }
 0xbf8   :  { %1354 = vtanh.f32 %v745_v51  ;;  %v1259_v1 = vmul.f32 -1.442695, %v745_v51 }
 0xbf9   :  { %1356 = vpow2.f32 %v1261_v0 }
 0xbfa   :  { %1358 = vpow2.f32 %v1259_v1 }
 0xbfd   :  { %v1353_v52 = vpop.eup %1352 }
 0xbfe   :  { %v1355_v53 = vpop.eup %1354  ;;  %830 = vrot.lane.b32.xlu0 %v1353_v52, %s1415_s17 }
 0xbff   :  { %769 = vrot.lane.b32.xlu1 %v1355_v53, %s1415_s17  ;;  %v1357_v4 = vpop.eup %1356 }
 0xc00   :  { %v1359_v5 = vpop.eup %1358  ;;  %v811_v7 = vadd.f32 1.0, %v1357_v4 }
 0xc01   :  { %v750_v54 = vadd.f32 1.0, %v1359_v5 }
 0xc02   :  { %1360 = vrcp.f32 %v811_v7  ;;  %v823_v38 = vand.u32 2147483648, %v811_v7  ;;  %vm817_vm0 = vweird.f32 %v811_v7  ;;  %v821_v58 = vand.u32 2147483647, %v811_v7 }
 0xc03   :  { %1362 = vrcp.f32 %v750_v54  ;;  %v762_v59 = vand.u32 2147483648, %v750_v54  ;;  %vm756_vm3 = vweird.f32 %v750_v54  ;;  %v760_v60 = vand.u32 2147483647, %v750_v54 }
 0xc04   :  { %v824_v62 = vor.u32 1.1754944e-38, %v823_v38  ;;  %vm822_vm5 = vcmp.eq.f32.partialorder %v821_v58, 8.507059e+37 }
 0xc05   :  { %v763_v2 = vor.u32 1.1754944e-38, %v762_v59  ;;  %vm761_vm8 = vcmp.eq.f32.partialorder %v760_v60, 8.507059e+37 }
 0xc08   :  { %v1361_v55 = vpop.eup %1360 }
 0xc09   :  { %v1363_v32 = vpop.eup %1362  ;;  %v813_v56 = vmul.f32 %v1361_v55, %v811_v7  ;;  %vm818_vm14 = vweird.f32 %v1361_v55 }
 0xc0a   :  { %v752_v57 = vmul.f32 %v1363_v32, %v750_v54  ;;  %vm757_vm15 = vweird.f32 %v1363_v32  ;;  %vm819_vm2 = vmor %vm817_vm0, %vm818_vm14 }
 0xc0b   :  { %v814_v33 = vsub.f32 1.0, %v813_v56  ;;  %vm758_vm4 = vmor %vm756_vm3, %vm757_vm15 }
 0xc0c   :  { %v753_v34 = vsub.f32 1.0, %v752_v57 }
 0xc0d   :  { %v815_v35 = vmul.f32 %v1361_v55, %v814_v33 }
 0xc0e   :  { %v754_v36 = vmul.f32 %v1363_v32, %v753_v34 }
 0xc0f   :  { %v816_v37 = vadd.f32 %v1361_v55, %v815_v35 }
 0xc10   :  { %v755_v41 = vadd.f32 %v1363_v32, %v754_v36 }
 0xc11   :  { %v820_v61 = vsel %vm819_vm2, %v1361_v55, %v816_v37 }
 0xc12   :  { %v759_v63 = vsel %vm758_vm4, %v1363_v32, %v755_v41  ;;  %v825_v6 = vsel %vm822_vm5, %v824_v62, %v820_v61 }
 0xc13   :  { %v764_v10 = vsel %vm761_vm8, %v763_v2, %v759_v63  ;;  %v828_v12 = vmul.f32 %v825_v6, %v1730_v26 }
 0xc14   :  { %v767_v16 = vmul.f32 %v764_v10, %v1728_v24  ;;  %v35_v24 = vld [vmem:[%s1850_s0 + $0x30] sm:$0xff] }
 0xc15   :  { %1239 = vmatmul.msk.f32.gmra.mxu0 %vm42_vm1, %v35_v24 }
 0xc70   :  { %v831_v3 = vpop.permute.xlu0 %830 }
 0xc71   :  { %v833_v8 = vmul.f32 %v831_v3, %v825_v6  ;;  %v770_v9 = vpop.permute.xlu1 %769 }
 0xc72   :  { %v772_v11 = vmul.f32 %v770_v9, %v764_v10 }
 0xc73   :  { %835 = vrot.lane.b32.xlu2 %v833_v8, %s1416_s18 }
 0xc74   :  { %774 = vrot.lane.b32.xlu0 %v772_v11, %s1416_s18 }
 0xc92   :  { %v106_v31 = vpop.f32.mrf.mxu0 }
 0xc93   :  { %v107_v30 = vadd.f32 %v1778_v28, %v106_v31 }
 0xccd   :  { %v836_v13 = vpop.permute.xlu2 %835 }
 0xcce   :  { %v1756_v14 = vadd.f32 %v836_v13, %v828_v12 }
 0xcd0   :  { %1364 = vtanh.f32 %v1756_v14 }
 0xcd6   :  { %v1365_v15 = vpop.eup %1364 }
 0xcd7   :  { %841 = vrot.lane.b32.xlu1 %v1365_v15, %s1415_s17 }
 0xce6   :  { %v775_v17 = vpop.permute.xlu0 %774 }
 0xce7   :  { %v1761_v18 = vadd.f32 %v775_v17, %v767_v16 }
 0xce9   :  { %1366 = vtanh.f32 %v1761_v18 }
 0xcef   :  { %v1367_v19 = vpop.eup %1366 }
 0xcf0   :  { %780 = vrot.lane.b32.xlu2 %v1367_v19, %s1415_s17 }
 0xd49   :  { %v842_v20 = vpop.permute.xlu1 %841 }
 0xd4a   :  { %v844_v21 = vmul.f32 %v842_v20, %v825_v6  ;;  %v781_v22 = vpop.permute.xlu2 %780 }
 0xd4b   :  { %v783_v23 = vmul.f32 %v781_v22, %v764_v10 }
 0xd4c   :  { %846 = vrot.lane.b32.xlu0 %v844_v21, %s1416_s18 }
 0xd4d   :  { %850 = vrot.lane.b32.xlu1 %v783_v23, %s1415_s17 }
 0xdbe   :  { %v847_v25 = vpop.permute.xlu0 %846 }
 0xdbf   :  { %1264 = vmatmul.msk.f32.vlgmr.msrb.gmra.mxu3 %vm137_vm6, %v847_v25  ;;  %v851_v26 = vpop.permute.xlu1 %850 }
 0xdc0   :  { %v853_v29 = vsel %vm137_vm6, %v847_v25, %v851_v26  ;;  %v1809_v25 = vld [vmem:[%s1853_s5] ss:$0 sm:$0xff] }
 0xdc1   :  { %1262 = vmatmul.msk.f32.vlgmr.msrb.gmra.mxu1 %vm203_vm7, %v853_v29 }
 0xe3e   :  { %v874_v43 = vpop.f32.mrf.mxu1 }
 0xe3f   :  { %v875_v40 = vadd.f32 %v1617_v49, %v874_v43 }
 0xe41   :  { %1368 = vtanh.f32 %v875_v40  ;;  %v1263_v45 = vmul.f32 -1.442695, %v875_v40 }
 0xe42   :  { %v935_v44 = vpop.f32.mrf.mxu3 }
 0xe43   :  { %v936_v42 = vadd.f32 %v935_v44, %v107_v30 }
 0xe45   :  { %1370 = vtanh.f32 %v936_v42  ;;  %v1265_v39 = vmul.f32 -1.442695, %v936_v42 }
 0xe46   :  { %1372 = vpow2.f32 %v1263_v45 }
 0xe47   :  { %v1369_v46 = vpop.eup %1368 }
 0xe48   :  { %899 = vrot.lane.b32.xlu2 %v1369_v46, %s1415_s17 }
 0xe4b   :  { %v1371_v47 = vpop.eup %1370 }
 0xe4c   :  { %960 = vrot.lane.b32.xlu0 %v1371_v47, %s1415_s17  ;;  %v1373_v49 = vpop.eup %1372 }
 0xe4d   :  { %v880_v27 = vadd.f32 1.0, %v1373_v49 }
 0xe4f   :  { %1374 = vrcp.f32 %v880_v27  ;;  %v892_v1 = vand.u32 2147483648, %v880_v27  ;;  %vm886_vm10 = vweird.f32 %v880_v27  ;;  %v890_v4 = vand.u32 2147483647, %v880_v27 }
 0xe50   :  { %1376 = vpow2.f32 %v1265_v39 }
 0xe51   :  { %v893_v54 = vor.u32 1.1754944e-38, %v892_v1  ;;  %vm891_vm12 = vcmp.eq.f32.partialorder %v890_v4, 8.507059e+37 }
 0xe55   :  { %v1375_v48 = vpop.eup %1374 }
 0xe56   :  { %v882_v50 = vmul.f32 %v1375_v48, %v880_v27  ;;  %v1377_v53 = vpop.eup %1376  ;;  %vm887_vm9 = vweird.f32 %v1375_v48 }
 0xe57   :  { %v941_v5 = vadd.f32 1.0, %v1377_v53  ;;  %vm888_vm11 = vmor %vm886_vm10, %vm887_vm9 }
 0xe58   :  { %v883_v51 = vsub.f32 1.0, %v882_v50 }
 0xe59   :  { %1378 = vrcp.f32 %v941_v5  ;;  %v953_v37 = vand.u32 2147483648, %v941_v5  ;;  %vm947_vm14 = vweird.f32 %v941_v5  ;;  %v951_v38 = vand.u32 2147483647, %v941_v5 }
 0xe5a   :  { %v884_v52 = vmul.f32 %v1375_v48, %v883_v51 }
 0xe5b   :  { %v954_v58 = vor.u32 1.1754944e-38, %v953_v37  ;;  %vm952_vm0 = vcmp.eq.f32.partialorder %v951_v38, 8.507059e+37 }
 0xe5c   :  { %v885_v0 = vadd.f32 %v1375_v48, %v884_v52 }
 0xe5e   :  { %v889_v7 = vsel %vm888_vm11, %v1375_v48, %v885_v0 }
 0xe5f   :  { %v894_v32 = vsel %vm891_vm12, %v893_v54, %v889_v7  ;;  %v1379_v57 = vpop.eup %1378 }
 0xe60   :  { %v943_v33 = vmul.f32 %v1379_v57, %v941_v5  ;;  %vm948_vm13 = vweird.f32 %v1379_v57  ;;  %v897_v62 = vmul.f32 %v894_v32, %v1761_v18 }
 0xe61   :  { %vm949_vm15 = vmor %vm947_vm14, %vm948_vm13 }
 0xe62   :  { %v944_v34 = vsub.f32 1.0, %v943_v33 }
 0xe64   :  { %v945_v35 = vmul.f32 %v1379_v57, %v944_v34 }
 0xe66   :  { %v946_v36 = vadd.f32 %v1379_v57, %v945_v35 }
 0xe68   :  { %v950_v41 = vsel %vm949_vm15, %v1379_v57, %v946_v36 }
 0xe69   :  { %v955_v60 = vsel %vm952_vm0, %v954_v58, %v950_v41 }
 0xe6a   :  { %v958_v3 = vmul.f32 %v955_v60, %v1756_v14  ;;  %v36_v14 = vld [vmem:[%s1850_s0 + $0x38] sm:$0xff] }
 0xe6b   :  { %1240 = vmatmul.msk.f32.gmra.mxu0 %vm42_vm1, %v36_v14 }
 0xea2   :  { %v900_v55 = vpop.permute.xlu2 %899 }
 0xea3   :  { %v902_v56 = vmul.f32 %v900_v55, %v894_v32 }
 0xea5   :  { %904 = vrot.lane.b32.xlu1 %v902_v56, %s1416_s18 }
 0xebe   :  { %v961_v59 = vpop.permute.xlu0 %960 }
 0xebf   :  { %v963_v61 = vmul.f32 %v961_v59, %v955_v60 }
 0xec1   :  { %965 = vrot.lane.b32.xlu2 %v963_v61, %s1416_s18 }
 0xee8   :  { %v109_v19 = vpop.f32.mrf.mxu0 }
 0xee9   :  { %v110_v20 = vadd.f32 %v1778_v28, %v109_v19 }
 0xf17   :  { %v905_v63 = vpop.permute.xlu1 %904 }
 0xf18   :  { %v1786_v2 = vadd.f32 %v905_v63, %v897_v62 }
 0xf1a   :  { %1380 = vtanh.f32 %v1786_v2 }
 0xf1b   :  { %v966_v6 = vpop.permute.xlu2 %965 }
 0xf1c   :  { %v1790_v8 = vadd.f32 %v966_v6, %v958_v3 }
 0xf1e   :  { %1382 = vtanh.f32 %v1790_v8 }
 0xf20   :  { %v1381_v9 = vpop.eup %1380 }
 0xf21   :  { %910 = vrot.lane.b32.xlu0 %v1381_v9, %s1415_s17 }
 0xf24   :  { %v1383_v10 = vpop.eup %1382 }
 0xf25   :  { %971 = vrot.lane.b32.xlu1 %v1383_v10, %s1415_s17 }
 0xf93   :  { %v911_v11 = vpop.permute.xlu0 %910 }
 0xf94   :  { %v913_v12 = vmul.f32 %v911_v11, %v894_v32 }
 0xf96   :  { %980 = vrot.lane.b32.xlu0 %v913_v12, %s1415_s17 }
 0xf97   :  { %v972_v13 = vpop.permute.xlu1 %971 }
 0xf98   :  { %v974_v15 = vmul.f32 %v972_v13, %v955_v60 }
 0xf9a   :  { %976 = vrot.lane.b32.xlu2 %v974_v15, %s1416_s18 }
 0xff4   :  { %v977_v16 = vpop.permute.xlu2 %976 }
 0xff5   :  { %1268 = vmatmul.msk.f32.vlgmr.msra.gmra.mxu3 %vm137_vm6, %v977_v16 }
0x1008   :  { %v981_v17 = vpop.permute.xlu0 %980 }
0x1009   :  { %v983_v18 = vsel %vm137_vm6, %v977_v16, %v981_v17 }
0x100a   :  { %1266 = vmatmul.msk.f32.vlgmr.msrb.gmra.mxu2 %vm203_vm7, %v983_v18 }
0x1078   :  { %v1065_v21 = vpop.f32.mrf.mxu3 }
0x1079   :  { %v1066_v22 = vadd.f32 %v1065_v21, %v110_v20 }
0x107b   :  { %1384 = vtanh.f32 %v1066_v22  ;;  %v1269_v31 = vmul.f32 -1.442695, %v1066_v22 }
0x1081   :  { %v1385_v23 = vpop.eup %1384 }
0x1082   :  { %1090 = vrot.lane.b32.xlu2 %v1385_v23, %s1415_s17 }
0x108d   :  { %v1004_v24 = vpop.f32.mrf.mxu2 }
0x108e   :  { %v1005_v26 = vadd.f32 %v1809_v25, %v1004_v24 }
0x1090   :  { %1386 = vtanh.f32 %v1005_v26  ;;  %v1267_v48 = vmul.f32 -1.442695, %v1005_v26 }
0x1091   :  { %1388 = vpow2.f32 %v1269_v31 }
0x1096   :  { %v1387_v29 = vpop.eup %1386 }
0x1097   :  { %1029 = vrot.lane.b32.xlu1 %v1387_v29, %s1415_s17  ;;  %v1389_v43 = vpop.eup %1388 }
0x1098   :  { %v1071_v40 = vadd.f32 1.0, %v1389_v43 }
0x109a   :  { %1390 = vrcp.f32 %v1071_v40  ;;  %v1083_v47 = vand.u32 2147483648, %v1071_v40  ;;  %vm1077_vm3 = vweird.f32 %v1071_v40  ;;  %v1081_v45 = vand.u32 2147483647, %v1071_v40 }
0x109b   :  { %1392 = vpow2.f32 %v1267_v48 }
0x109c   :  { %v1084_v27 = vor.u32 1.1754944e-38, %v1083_v47  ;;  %vm1082_vm5 = vcmp.eq.f32.partialorder %v1081_v45, 8.507059e+37 }
0x10a0   :  { %v1391_v28 = vpop.eup %1390 }
0x10a1   :  { %v1073_v30 = vmul.f32 %v1391_v28, %v1071_v40  ;;  %vm1078_vm2 = vweird.f32 %v1391_v28  ;;  %v1393_v52 = vpop.eup %1392 }
0x10a2   :  { %vm1079_vm4 = vmor %vm1077_vm3, %vm1078_vm2  ;;  %v1010_v53 = vadd.f32 1.0, %v1393_v52 }
0x10a3   :  { %v1074_v44 = vsub.f32 1.0, %v1073_v30  ;;  %v1177_v30 = vld [vmem:[%s1854_s6 + $0x10] sm:$0xff] }
0x10a4   :  { %1394 = vrcp.f32 %v1010_v53  ;;  %v1022_v54 = vand.u32 2147483648, %v1010_v53  ;;  %vm1016_vm9 = vweird.f32 %v1010_v53  ;;  %v1020_v55 = vand.u32 2147483647, %v1010_v53 }
0x10a5   :  { %v1075_v42 = vmul.f32 %v1391_v28, %v1074_v44  ;;  %v1176_v44 = vld [vmem:[%s1854_s6 + $0x8] sm:$0xff] }
0x10a6   :  { %v1023_v56 = vor.u32 1.1754944e-38, %v1022_v54  ;;  %vm1021_vm11 = vcmp.eq.f32.partialorder %v1020_v55, 8.507059e+37 }
0x10a7   :  { %v1076_v46 = vadd.f32 %v1391_v28, %v1075_v42  ;;  %v1175_v42 = vld [vmem:[%s1854_s6] sm:$0xff] }
0x10a9   :  { %v1080_v49 = vsel %vm1079_vm4, %v1391_v28, %v1076_v46  ;;  %v1178_v28 = vld [vmem:[%s1854_s6 + $0x18] sm:$0xff] }
0x10aa   :  { %v1085_v39 = vsel %vm1082_vm5, %v1084_v27, %v1080_v49  ;;  %v1395_v0 = vpop.eup %1394  ;;  %1200 = vmatpush.msra.mxu1 %v1178_v28  ;;  %v1279_v27 = vld [vmem:[%s1855_s7] ss:$0 sm:$0xff] }
0x10ab   :  { %v1012_v1 = vmul.f32 %v1395_v0, %v1010_v53  ;;  %vm1017_vm8 = vweird.f32 %v1395_v0  ;;  %v1088_v35 = vmul.f32 %v1085_v39, %v1790_v8 }
0x10ac   :  { %vm1018_vm10 = vmor %vm1016_vm9, %vm1017_vm8  ;;  %1201 = vmatpush.msra.mxu1 %v1177_v30 }
0x10ad   :  { %v1013_v4 = vsub.f32 1.0, %v1012_v1 }
0x10ae   :  { %1202 = vmatpush.msra.mxu1 %v1176_v44 }
0x10af   :  { %v1014_v5 = vmul.f32 %v1395_v0, %v1013_v4 }
0x10b0   :  { %1203 = vmatpush.msra.mxu1 %v1175_v42 }
0x10b1   :  { %v1015_v7 = vadd.f32 %v1395_v0, %v1014_v5 }
0x10b3   :  { %v1019_v32 = vsel %vm1018_vm10, %v1395_v0, %v1015_v7 }
0x10b4   :  { %v1024_v33 = vsel %vm1021_vm11, %v1023_v56, %v1019_v32 }
0x10b5   :  { %v1027_v41 = vmul.f32 %v1024_v33, %v1786_v2 }
0x10dc   :  { %v1091_v50 = vpop.permute.xlu2 %1090 }
0x10dd   :  { %v1093_v51 = vmul.f32 %v1091_v50, %v1085_v39 }
0x10df   :  { %1095 = vrot.lane.b32.xlu1 %v1093_v51, %s1416_s18 }
0x1109   :  { %v1030_v57 = vpop.permute.xlu1 %1029 }
0x110a   :  { %v1032_v34 = vmul.f32 %v1030_v57, %v1024_v33 }
0x110c   :  { %1034 = vrot.lane.b32.xlu0 %v1032_v34, %s1416_s18 }
0x1151   :  { %v1096_v36 = vpop.permute.xlu1 %1095 }
0x1152   :  { %v1098_v37 = vadd.f32 %v1096_v36, %v1088_v35 }
0x1154   :  { %1396 = vtanh.f32 %v1098_v37 }
0x115a   :  { %v1397_v38 = vpop.eup %1396 }
0x115b   :  { %1101 = vrot.lane.b32.xlu0 %v1397_v38, %s1415_s17 }
0x117e   :  { %v1035_v58 = vpop.permute.xlu0 %1034 }
0x117f   :  { %v1037_v59 = vadd.f32 %v1035_v58, %v1027_v41 }
0x1181   :  { %1398 = vtanh.f32 %v1037_v59 }
0x1187   :  { %v1399_v60 = vpop.eup %1398 }
0x1188   :  { %1040 = vrot.lane.b32.xlu2 %v1399_v60, %s1415_s17 }
0x11cd   :  { %v1102_v61 = vpop.permute.xlu0 %1101 }
0x11ce   :  { %v1104_v62 = vmul.f32 %v1102_v61, %v1085_v39 }
0x11d0   :  { %1106 = vrot.lane.b32.xlu1 %v1104_v62, %s1416_s18 }
0x11e2   :  { %v1041_v63 = vpop.permute.xlu2 %1040 }
0x11e3   :  { %v1043_v3 = vmul.f32 %v1041_v63, %v1024_v33 }
0x11e5   :  { %1110 = vrot.lane.b32.xlu2 %v1043_v3, %s1415_s17 }
0x123f   :  { %v1111_v6 = vpop.permute.xlu2 %1110 }
0x1242   :  { %v1107_v8 = vpop.permute.xlu1 %1106 }
0x1243   :  { %v1113_v9 = vsel %vm137_vm6, %v1107_v8, %v1111_v6 }
0x1244   :  { %1270 = vmatmul.msk.f32.vlgmr.msrb.gmra.mxu0 %vm203_vm7, %v1113_v9 }
0x12c1   :  { %v1134_v2 = vpop.f32.mrf.mxu0 }
0x12c2   :  { %v1135_v10 = vadd.f32 %v1809_v25, %v1134_v2 }
0x12c4   :  { %1400 = vtanh.f32 %v1135_v10  ;;  %v1271_v12 = vmul.f32 -1.442695, %v1135_v10 }
0x12c6   :  { %1402 = vpow2.f32 %v1271_v12 }
0x12ca   :  { %v1401_v11 = vpop.eup %1400 }
0x12cb   :  { %1159 = vrot.lane.b32.xlu0 %v1401_v11, %s1415_s17 }
0x12cc   :  { %v1403_v13 = vpop.eup %1402 }
0x12cd   :  { %v1140_v15 = vadd.f32 1.0, %v1403_v13 }
0x12cf   :  { %1404 = vrcp.f32 %v1140_v15  ;;  %v1152_v20 = vand.u32 2147483648, %v1140_v15  ;;  %vm1146_vm7 = vweird.f32 %v1140_v15  ;;  %v1150_v21 = vand.u32 2147483647, %v1140_v15 }
0x12d1   :  { %v1153_v23 = vor.u32 1.1754944e-38, %v1152_v20  ;;  %vm1151_vm14 = vcmp.eq.f32.partialorder %v1150_v21, 8.507059e+37 }
0x12d5   :  { %v1405_v14 = vpop.eup %1404 }
0x12d6   :  { %v1142_v16 = vmul.f32 %v1405_v14, %v1140_v15  ;;  %vm1147_vm12 = vweird.f32 %v1405_v14 }
0x12d7   :  { %vm1148_vm13 = vmor %vm1146_vm7, %vm1147_vm12 }
0x12d8   :  { %v1143_v17 = vsub.f32 1.0, %v1142_v16 }
0x12da   :  { %v1144_v18 = vmul.f32 %v1405_v14, %v1143_v17 }
0x12dc   :  { %v1145_v19 = vadd.f32 %v1405_v14, %v1144_v18 }
0x12de   :  { %v1149_v22 = vsel %vm1148_vm13, %v1405_v14, %v1145_v19 }
0x12df   :  { %v1154_v25 = vsel %vm1151_vm14, %v1153_v23, %v1149_v22 }
0x12e0   :  { %v1157_v29 = vmul.f32 %v1154_v25, %v1037_v59 }
0x133d   :  { %v1160_v24 = vpop.permute.xlu0 %1159 }
0x133e   :  { %v1162_v26 = vmul.f32 %v1160_v24, %v1154_v25 }
0x1340   :  { %1164 = vrot.lane.b32.xlu1 %v1162_v26, %s1416_s18 }
0x13b2   :  { %v1165_v31 = vpop.permute.xlu1 %1164 }
0x13b3   :  { %v1167_v43 = vadd.f32 %v1165_v31, %v1157_v29 }
0x13b5   :  { %1406 = vtanh.f32 %v1167_v43 }
0x13bb   :  { %v1407_v40 = vpop.eup %1406 }
0x13bc   :  { %1170 = vrot.lane.b32.xlu2 %v1407_v40, %s1415_s17 }
0x1416   :  { %v1171_v46 = vpop.permute.xlu2 %1170 }
0x1417   :  { %v1173_v47 = vmul.f32 %v1171_v46, %v1154_v25 }
0x1419   :  { %v1174_v45 = vmax.f32 %v1173_v47, 0.0 }
0x141b   :  { %1184 = vrot.lane.b32.xlu0 %v1174_v45, %s1416_s18 }
0x148d   :  { %v1185_v49 = vpop.permute.xlu0 %1184 }
0x148e   :  { %1272 = vmatmul.msk.f32.vlgmr.msra.gmra.mxu1 %vm137_vm6, %v1185_v49 }
0x150b   :  { %v1205_v48 = vpop.f32.mrf.mxu1 }
0x150c   :  { %v1206_v50 = vadd.f32 %v1279_v27, %v1205_v48 }
0x150e   :  { %v1273_v39 = vmul.f32 -1.442695, %v1206_v50 }
0x1510   :  { %1408 = vpow2.f32 %v1273_v39 }
0x1516   :  { %v1409_v51 = vpop.eup %1408 }
0x1517   :  { %v1211_v52 = vadd.f32 1.0, %v1409_v51 }
0x1519   :  { %1410 = vrcp.f32 %v1211_v52  ;;  %v1223_v4 = vand.u32 2147483648, %v1211_v52  ;;  %v1221_v7 = vand.u32 2147483647, %v1211_v52  ;;  %vm1217_vm6 = vweird.f32 %v1211_v52 }
0x151b   :  { %v1224_v55 = vor.u32 1.1754944e-38, %v1223_v4  ;;  %vm1222_vm2 = vcmp.eq.f32.partialorder %v1221_v7, 8.507059e+37 }
0x151f   :  { %v1411_v53 = vpop.eup %1410 }
0x1520   :  { %v1213_v0 = vmul.f32 %v1411_v53, %v1211_v52  ;;  %vm1218_vm15 = vweird.f32 %v1411_v53 }
0x1521   :  { %vm1219_vm0 = vmor %vm1217_vm6, %vm1218_vm15 }
0x1522   :  { %v1214_v1 = vsub.f32 1.0, %v1213_v0 }
0x1524   :  { %v1215_v5 = vmul.f32 %v1411_v53, %v1214_v1 }
0x1526   :  { %v1216_v54 = vadd.f32 %v1411_v53, %v1215_v5 }
0x1528   :  { %v1220_v32 = vsel %vm1219_vm0, %v1411_v53, %v1216_v54 }
0x1529   :  { %v1225_v56 = vsel %vm1222_vm2, %v1224_v55, %v1220_v32 }
0x152a   :  { %1227 = vst.msk [vmem:[%s1856_s8] sm:$0xff] %vm42_vm1, %v1225_v56 }

</bundles_post_ra>
